<compile_context>
chip_gen: v6e
topology: v6e:2x2x1
jax: 0.10.0
libtpu: 0.0.40
codegen_flags: <defaults>
</compile_context>

<pallas_src>
import functools

import jax
import jax.numpy as jnp
from jax import lax
from jax.experimental import pallas as pl
from jax.experimental.pallas import tpu as pltpu

LANES = 128   # vreg lane width: batch goes on the lane axis
H1 = 8        # hidden width of layer 1
H2 = 8        # hidden width of layer 2


def _mlp_kernel(x_ref, nrows_ref, w1_ref, b1_ref, w2_ref, b2_ref, w3_ref,
                b3_ref, o_ref, *, chunk_rows):
    # Hoist all (tiny) weights/biases out of the loop as SMEM scalar reads.
    w1 = [w1_ref[k] for k in range(H1)]
    b1 = [b1_ref[k] for k in range(H1)]
    w2 = [[w2_ref[k * H2 + j] for j in range(H2)] for k in range(H1)]
    b2 = [b2_ref[j] for j in range(H2)]
    w3 = [w3_ref[j] for j in range(H2)]
    b3 = b3_ref[0]

    tb = x_ref.shape[0]
    n_chunks = tb // chunk_rows
    valid_rows = nrows_ref[0]                 # total rows that hold real data
    block_row0 = pl.program_id(0) * tb        # first global row of this block

    def body(c, carry):
        r = pl.multiple_of(c * chunk_rows, chunk_rows)

        # Skip chunks that are entirely past the valid data (dead padding).
        @pl.when(block_row0 + r < valid_rows)
        def _():
            x = x_ref[pl.ds(r, chunk_rows), :]              # (chunk_rows, 128)

            # Layer 1 channel 0 seeds the layer-2 accumulators with the bias
            # folded into the first FMA (no full-tile bias splats).
            h1k = jnp.maximum(x * w1[0] + b1[0], 0.0)
            h2 = [h1k * w2[0][j] + b2[j] for j in range(H2)]
            for k in range(1, H1):
                h1k = jnp.maximum(x * w1[k] + b1[k], 0.0)   # ReLU(Linear(1,8))_k
                for j in range(H2):
                    h2[j] = h2[j] + h1k * w2[k][j]

            # ReLU on layer 2, then 8 -> 1 reduction (layer 3), bias folded in.
            y = jnp.maximum(h2[0], 0.0) * w3[0] + b3
            for j in range(1, H2):
                y = y + jnp.maximum(h2[j], 0.0) * w3[j]

            o_ref[pl.ds(r, chunk_rows), :] = y.astype(o_ref.dtype)

        return carry

    lax.fori_loop(0, n_chunks, body, 0, unroll=min(2, n_chunks))


def _choose_tile(rows, block_rows, chunk_rows):
    """Tile (rows per grid step): multiple of chunk_rows, <= block_rows, and
    small enough that the batch splits into >= 2 grid steps when possible so
    both v7x TensorCores get work."""
    def rup(a, m):
        return pl.cdiv(a, m) * m
    tb = min(block_rows, rup(pl.cdiv(rows, 2), chunk_rows))
    tb = max(tb, chunk_rows)
    tb = min(tb, rup(rows, chunk_rows))
    return tb


def quadratic_mlp(x, params, *, block_rows=2048, chunk_rows=32):
    """Fused Linear(1,8)-ReLU-Linear(8,8)-ReLU-Linear(8,1) forward.

    x: (N, 1) float32.  params holds flattened weights (see init_params):
    w1:(8,), b1:(8,), w2:(64,) [in-major], b2:(8,), w3:(8,), b3:(1,).
    """
    assert x.ndim == 2 and x.shape[1] == 1
    assert block_rows % chunk_rows == 0 and chunk_rows % 8 == 0
    N = x.shape[0]

    # Lane-dense layout: batch -> (rows, 128). rows is exact (no rounding up
    # to the tile); Pallas masks the partial final block.
    rows = pl.cdiv(N, LANES)
    tb = _choose_tile(rows, block_rows, chunk_rows)
    grid_steps = pl.cdiv(rows, tb)

    xf = x.reshape(-1)
    pad = rows * LANES - N
    if pad:                                   # only the ragged tail; free when N % 128 == 0
        xf = jnp.pad(xf, (0, pad))
    xf = xf.reshape(rows, LANES)

    nrows = jnp.array([rows], jnp.int32)

    smem = pl.BlockSpec(memory_space=pltpu.MemorySpace.SMEM)
    out = pl.pallas_call(
        functools.partial(_mlp_kernel, chunk_rows=chunk_rows),
        out_shape=jax.ShapeDtypeStruct((rows, LANES), x.dtype),
        grid_spec=pl.GridSpec(
            grid=(grid_steps,),
            in_specs=[
                pl.BlockSpec((tb, LANES), lambda i: (i, 0)),   # lane-dense batch
                smem,                                          # valid-row count
                smem, smem,                                    # layer 1 (w, b)
                smem, smem,                                    # layer 2 (w, b)
                smem, smem,                                    # layer 3 (w, b)
            ],
            out_specs=pl.BlockSpec((tb, LANES), lambda i: (i, 0)),
        ),
        compiler_params=pltpu.CompilerParams(
            dimension_semantics=("parallel",),
        ),
    )(xf, nrows, params["w1"], params["b1"], params["w2"], params["b2"],
      params["w3"], params["b3"])

    out = out.reshape(-1)
    if pad:
        out = out[:N]
    return out.reshape(N, 1)


def init_params(key):
    """PyTorch-style init U(-1/sqrt(fan_in), +1/sqrt(fan_in)), stored flat.

    w{i} is flattened (in_features, out_features) row-major, so
    w2[k*8 + j] multiplies hidden-1 channel k into hidden-2 channel j.
    """
    dims = [(1, H1), (H1, H2), (H2, 1)]
    params = {}
    for idx, (fan_in, fan_out) in enumerate(dims, start=1):
        key, kw, kb = jax.random.split(key, 3)
        bound = 1.0 / (fan_in ** 0.5)
        params[f"w{idx}"] = jax.random.uniform(
            kw, (fan_in * fan_out,), jnp.float32, minval=-bound, maxval=bound)
        params[f"b{idx}"] = jax.random.uniform(
            kb, (fan_out,), jnp.float32, minval=-bound, maxval=bound)
    return params


def _reference(x, p):
    w1 = p["w1"].reshape(1, H1)
    w2 = p["w2"].reshape(H1, H2)
    w3 = p["w3"].reshape(H2, 1)
    h1 = jnp.maximum(x @ w1 + p["b1"], 0.0)
    h2 = jnp.maximum(h1 @ w2 + p["b2"], 0.0)
    return h2 @ w3 + p["b3"]


if __name__ == "__main__":
    params = init_params(jax.random.PRNGKey(0))

    # Small batch of scalar inputs (x values for the y = x^2 approximation).
    # Ragged N: pads the tail to one 128-lane row.
    x = jax.random.uniform(jax.random.PRNGKey(0), (16, 1), jnp.float32,
                           minval=-2.0, maxval=2.0)
    out = jax.block_until_ready(quadratic_mlp(x, params))
    ref = _reference(x, params)
    assert out.shape == (16, 1)
    assert jnp.allclose(out, ref, atol=1e-5, rtol=1e-5), "mismatch vs reference"

    # Exact multiple of 128: zero-pad / output-slice are skipped entirely.
    x2 = jax.random.uniform(jax.random.PRNGKey(1), (256, 1), jnp.float32,
                            minval=-2.0, maxval=2.0)
    out2 = jax.block_until_ready(
        quadratic_mlp(x2, params, block_rows=8, chunk_rows=8))
    ref2 = _reference(x2, params)
    assert out2.shape == (256, 1)
    assert jnp.allclose(out2, ref2, atol=1e-5, rtol=1e-5), "mismatch (exact)"

    # Ragged N, multi-step grid, partial final block and skipped dead chunks.
    x3 = jax.random.uniform(jax.random.PRNGKey(2), (3000, 1), jnp.float32,
                            minval=-2.0, maxval=2.0)
    out3 = jax.block_until_ready(
        quadratic_mlp(x3, params, block_rows=16, chunk_rows=8))
    ref3 = _reference(x3, params)
    assert out3.shape == (3000, 1)
    assert jnp.allclose(out3, ref3, atol=1e-5, rtol=1e-5), "mismatch (padded)"

    print("KERNEL_OK")
</pallas_src>

<mosaic_0001>
module attributes {stable_mosaic.version = 11 : i64} {
  func.func @_mlp_kernel(%arg0: i32, %arg1: memref<32x128xf32, #tpu.memory_space<vmem>>, %arg2: memref<1xi32, #tpu.memory_space<smem>>, %arg3: memref<8xf32, #tpu.memory_space<smem>>, %arg4: memref<8xf32, #tpu.memory_space<smem>>, %arg5: memref<64xf32, #tpu.memory_space<smem>>, %arg6: memref<8xf32, #tpu.memory_space<smem>>, %arg7: memref<8xf32, #tpu.memory_space<smem>>, %arg8: memref<1xf32, #tpu.memory_space<smem>>, %arg9: memref<32x128xf32, #tpu.memory_space<vmem>>) attributes {dimension_semantics = [#tpu.dimension_semantics<parallel>], iteration_bounds = array<i64: 1>, scalar_prefetch = 0 : i64, scratch_operands = 0 : i64, tpu.core_type = #tpu.core_type<tc>, window_params = [{transform_indices = @transform_0, window_bounds = array<i64: 32, 128>}, {transform_indices = @transform_1, window_bounds = array<i64: 1>}, {transform_indices = @transform_2, window_bounds = array<i64: 8>}, {transform_indices = @transform_3, window_bounds = array<i64: 8>}, {transform_indices = @transform_4, window_bounds = array<i64: 64>}, {transform_indices = @transform_5, window_bounds = array<i64: 8>}, {transform_indices = @transform_6, window_bounds = array<i64: 8>}, {transform_indices = @transform_7, window_bounds = array<i64: 1>}, {transform_indices = @transform_8, window_bounds = array<i64: 32, 128>}]} {
    %c0 = arith.constant 0 : index
    %0 = memref.load %arg3[%c0] : memref<8xf32, #tpu.memory_space<smem>>
    %c1 = arith.constant 1 : index
    %1 = memref.load %arg3[%c1] : memref<8xf32, #tpu.memory_space<smem>>
    %c2 = arith.constant 2 : index
    %2 = memref.load %arg3[%c2] : memref<8xf32, #tpu.memory_space<smem>>
    %c3 = arith.constant 3 : index
    %3 = memref.load %arg3[%c3] : memref<8xf32, #tpu.memory_space<smem>>
    %c4 = arith.constant 4 : index
    %4 = memref.load %arg3[%c4] : memref<8xf32, #tpu.memory_space<smem>>
    %c5 = arith.constant 5 : index
    %5 = memref.load %arg3[%c5] : memref<8xf32, #tpu.memory_space<smem>>
    %c6 = arith.constant 6 : index
    %6 = memref.load %arg3[%c6] : memref<8xf32, #tpu.memory_space<smem>>
    %c7 = arith.constant 7 : index
    %7 = memref.load %arg3[%c7] : memref<8xf32, #tpu.memory_space<smem>>
    %c0_0 = arith.constant 0 : index
    %8 = memref.load %arg4[%c0_0] : memref<8xf32, #tpu.memory_space<smem>>
    %c1_1 = arith.constant 1 : index
    %9 = memref.load %arg4[%c1_1] : memref<8xf32, #tpu.memory_space<smem>>
    %c2_2 = arith.constant 2 : index
    %10 = memref.load %arg4[%c2_2] : memref<8xf32, #tpu.memory_space<smem>>
    %c3_3 = arith.constant 3 : index
    %11 = memref.load %arg4[%c3_3] : memref<8xf32, #tpu.memory_space<smem>>
    %c4_4 = arith.constant 4 : index
    %12 = memref.load %arg4[%c4_4] : memref<8xf32, #tpu.memory_space<smem>>
    %c5_5 = arith.constant 5 : index
    %13 = memref.load %arg4[%c5_5] : memref<8xf32, #tpu.memory_space<smem>>
    %c6_6 = arith.constant 6 : index
    %14 = memref.load %arg4[%c6_6] : memref<8xf32, #tpu.memory_space<smem>>
    %c7_7 = arith.constant 7 : index
    %15 = memref.load %arg4[%c7_7] : memref<8xf32, #tpu.memory_space<smem>>
    %c0_8 = arith.constant 0 : index
    %16 = memref.load %arg5[%c0_8] : memref<64xf32, #tpu.memory_space<smem>>
    %c1_9 = arith.constant 1 : index
    %17 = memref.load %arg5[%c1_9] : memref<64xf32, #tpu.memory_space<smem>>
    %c2_10 = arith.constant 2 : index
    %18 = memref.load %arg5[%c2_10] : memref<64xf32, #tpu.memory_space<smem>>
    %c3_11 = arith.constant 3 : index
    %19 = memref.load %arg5[%c3_11] : memref<64xf32, #tpu.memory_space<smem>>
    %c4_12 = arith.constant 4 : index
    %20 = memref.load %arg5[%c4_12] : memref<64xf32, #tpu.memory_space<smem>>
    %c5_13 = arith.constant 5 : index
    %21 = memref.load %arg5[%c5_13] : memref<64xf32, #tpu.memory_space<smem>>
    %c6_14 = arith.constant 6 : index
    %22 = memref.load %arg5[%c6_14] : memref<64xf32, #tpu.memory_space<smem>>
    %c7_15 = arith.constant 7 : index
    %23 = memref.load %arg5[%c7_15] : memref<64xf32, #tpu.memory_space<smem>>
    %c8 = arith.constant 8 : index
    %24 = memref.load %arg5[%c8] : memref<64xf32, #tpu.memory_space<smem>>
    %c9 = arith.constant 9 : index
    %25 = memref.load %arg5[%c9] : memref<64xf32, #tpu.memory_space<smem>>
    %c10 = arith.constant 10 : index
    %26 = memref.load %arg5[%c10] : memref<64xf32, #tpu.memory_space<smem>>
    %c11 = arith.constant 11 : index
    %27 = memref.load %arg5[%c11] : memref<64xf32, #tpu.memory_space<smem>>
    %c12 = arith.constant 12 : index
    %28 = memref.load %arg5[%c12] : memref<64xf32, #tpu.memory_space<smem>>
    %c13 = arith.constant 13 : index
    %29 = memref.load %arg5[%c13] : memref<64xf32, #tpu.memory_space<smem>>
    %c14 = arith.constant 14 : index
    %30 = memref.load %arg5[%c14] : memref<64xf32, #tpu.memory_space<smem>>
    %c15 = arith.constant 15 : index
    %31 = memref.load %arg5[%c15] : memref<64xf32, #tpu.memory_space<smem>>
    %c16 = arith.constant 16 : index
    %32 = memref.load %arg5[%c16] : memref<64xf32, #tpu.memory_space<smem>>
    %c17 = arith.constant 17 : index
    %33 = memref.load %arg5[%c17] : memref<64xf32, #tpu.memory_space<smem>>
    %c18 = arith.constant 18 : index
    %34 = memref.load %arg5[%c18] : memref<64xf32, #tpu.memory_space<smem>>
    %c19 = arith.constant 19 : index
    %35 = memref.load %arg5[%c19] : memref<64xf32, #tpu.memory_space<smem>>
    %c20 = arith.constant 20 : index
    %36 = memref.load %arg5[%c20] : memref<64xf32, #tpu.memory_space<smem>>
    %c21 = arith.constant 21 : index
    %37 = memref.load %arg5[%c21] : memref<64xf32, #tpu.memory_space<smem>>
    %c22 = arith.constant 22 : index
    %38 = memref.load %arg5[%c22] : memref<64xf32, #tpu.memory_space<smem>>
    %c23 = arith.constant 23 : index
    %39 = memref.load %arg5[%c23] : memref<64xf32, #tpu.memory_space<smem>>
    %c24 = arith.constant 24 : index
    %40 = memref.load %arg5[%c24] : memref<64xf32, #tpu.memory_space<smem>>
    %c25 = arith.constant 25 : index
    %41 = memref.load %arg5[%c25] : memref<64xf32, #tpu.memory_space<smem>>
    %c26 = arith.constant 26 : index
    %42 = memref.load %arg5[%c26] : memref<64xf32, #tpu.memory_space<smem>>
    %c27 = arith.constant 27 : index
    %43 = memref.load %arg5[%c27] : memref<64xf32, #tpu.memory_space<smem>>
    %c28 = arith.constant 28 : index
    %44 = memref.load %arg5[%c28] : memref<64xf32, #tpu.memory_space<smem>>
    %c29 = arith.constant 29 : index
    %45 = memref.load %arg5[%c29] : memref<64xf32, #tpu.memory_space<smem>>
    %c30 = arith.constant 30 : index
    %46 = memref.load %arg5[%c30] : memref<64xf32, #tpu.memory_space<smem>>
    %c31 = arith.constant 31 : index
    %47 = memref.load %arg5[%c31] : memref<64xf32, #tpu.memory_space<smem>>
    %c32 = arith.constant 32 : index
    %48 = memref.load %arg5[%c32] : memref<64xf32, #tpu.memory_space<smem>>
    %c33 = arith.constant 33 : index
    %49 = memref.load %arg5[%c33] : memref<64xf32, #tpu.memory_space<smem>>
    %c34 = arith.constant 34 : index
    %50 = memref.load %arg5[%c34] : memref<64xf32, #tpu.memory_space<smem>>
    %c35 = arith.constant 35 : index
    %51 = memref.load %arg5[%c35] : memref<64xf32, #tpu.memory_space<smem>>
    %c36 = arith.constant 36 : index
    %52 = memref.load %arg5[%c36] : memref<64xf32, #tpu.memory_space<smem>>
    %c37 = arith.constant 37 : index
    %53 = memref.load %arg5[%c37] : memref<64xf32, #tpu.memory_space<smem>>
    %c38 = arith.constant 38 : index
    %54 = memref.load %arg5[%c38] : memref<64xf32, #tpu.memory_space<smem>>
    %c39 = arith.constant 39 : index
    %55 = memref.load %arg5[%c39] : memref<64xf32, #tpu.memory_space<smem>>
    %c40 = arith.constant 40 : index
    %56 = memref.load %arg5[%c40] : memref<64xf32, #tpu.memory_space<smem>>
    %c41 = arith.constant 41 : index
    %57 = memref.load %arg5[%c41] : memref<64xf32, #tpu.memory_space<smem>>
    %c42 = arith.constant 42 : index
    %58 = memref.load %arg5[%c42] : memref<64xf32, #tpu.memory_space<smem>>
    %c43 = arith.constant 43 : index
    %59 = memref.load %arg5[%c43] : memref<64xf32, #tpu.memory_space<smem>>
    %c44 = arith.constant 44 : index
    %60 = memref.load %arg5[%c44] : memref<64xf32, #tpu.memory_space<smem>>
    %c45 = arith.constant 45 : index
    %61 = memref.load %arg5[%c45] : memref<64xf32, #tpu.memory_space<smem>>
    %c46 = arith.constant 46 : index
    %62 = memref.load %arg5[%c46] : memref<64xf32, #tpu.memory_space<smem>>
    %c47 = arith.constant 47 : index
    %63 = memref.load %arg5[%c47] : memref<64xf32, #tpu.memory_space<smem>>
    %c48 = arith.constant 48 : index
    %64 = memref.load %arg5[%c48] : memref<64xf32, #tpu.memory_space<smem>>
    %c49 = arith.constant 49 : index
    %65 = memref.load %arg5[%c49] : memref<64xf32, #tpu.memory_space<smem>>
    %c50 = arith.constant 50 : index
    %66 = memref.load %arg5[%c50] : memref<64xf32, #tpu.memory_space<smem>>
    %c51 = arith.constant 51 : index
    %67 = memref.load %arg5[%c51] : memref<64xf32, #tpu.memory_space<smem>>
    %c52 = arith.constant 52 : index
    %68 = memref.load %arg5[%c52] : memref<64xf32, #tpu.memory_space<smem>>
    %c53 = arith.constant 53 : index
    %69 = memref.load %arg5[%c53] : memref<64xf32, #tpu.memory_space<smem>>
    %c54 = arith.constant 54 : index
    %70 = memref.load %arg5[%c54] : memref<64xf32, #tpu.memory_space<smem>>
    %c55 = arith.constant 55 : index
    %71 = memref.load %arg5[%c55] : memref<64xf32, #tpu.memory_space<smem>>
    %c56 = arith.constant 56 : index
    %72 = memref.load %arg5[%c56] : memref<64xf32, #tpu.memory_space<smem>>
    %c57 = arith.constant 57 : index
    %73 = memref.load %arg5[%c57] : memref<64xf32, #tpu.memory_space<smem>>
    %c58 = arith.constant 58 : index
    %74 = memref.load %arg5[%c58] : memref<64xf32, #tpu.memory_space<smem>>
    %c59 = arith.constant 59 : index
    %75 = memref.load %arg5[%c59] : memref<64xf32, #tpu.memory_space<smem>>
    %c60 = arith.constant 60 : index
    %76 = memref.load %arg5[%c60] : memref<64xf32, #tpu.memory_space<smem>>
    %c61 = arith.constant 61 : index
    %77 = memref.load %arg5[%c61] : memref<64xf32, #tpu.memory_space<smem>>
    %c62 = arith.constant 62 : index
    %78 = memref.load %arg5[%c62] : memref<64xf32, #tpu.memory_space<smem>>
    %c63 = arith.constant 63 : index
    %79 = memref.load %arg5[%c63] : memref<64xf32, #tpu.memory_space<smem>>
    %c0_16 = arith.constant 0 : index
    %80 = memref.load %arg6[%c0_16] : memref<8xf32, #tpu.memory_space<smem>>
    %c1_17 = arith.constant 1 : index
    %81 = memref.load %arg6[%c1_17] : memref<8xf32, #tpu.memory_space<smem>>
    %c2_18 = arith.constant 2 : index
    %82 = memref.load %arg6[%c2_18] : memref<8xf32, #tpu.memory_space<smem>>
    %c3_19 = arith.constant 3 : index
    %83 = memref.load %arg6[%c3_19] : memref<8xf32, #tpu.memory_space<smem>>
    %c4_20 = arith.constant 4 : index
    %84 = memref.load %arg6[%c4_20] : memref<8xf32, #tpu.memory_space<smem>>
    %c5_21 = arith.constant 5 : index
    %85 = memref.load %arg6[%c5_21] : memref<8xf32, #tpu.memory_space<smem>>
    %c6_22 = arith.constant 6 : index
    %86 = memref.load %arg6[%c6_22] : memref<8xf32, #tpu.memory_space<smem>>
    %c7_23 = arith.constant 7 : index
    %87 = memref.load %arg6[%c7_23] : memref<8xf32, #tpu.memory_space<smem>>
    %c0_24 = arith.constant 0 : index
    %88 = memref.load %arg7[%c0_24] : memref<8xf32, #tpu.memory_space<smem>>
    %c1_25 = arith.constant 1 : index
    %89 = memref.load %arg7[%c1_25] : memref<8xf32, #tpu.memory_space<smem>>
    %c2_26 = arith.constant 2 : index
    %90 = memref.load %arg7[%c2_26] : memref<8xf32, #tpu.memory_space<smem>>
    %c3_27 = arith.constant 3 : index
    %91 = memref.load %arg7[%c3_27] : memref<8xf32, #tpu.memory_space<smem>>
    %c4_28 = arith.constant 4 : index
    %92 = memref.load %arg7[%c4_28] : memref<8xf32, #tpu.memory_space<smem>>
    %c5_29 = arith.constant 5 : index
    %93 = memref.load %arg7[%c5_29] : memref<8xf32, #tpu.memory_space<smem>>
    %c6_30 = arith.constant 6 : index
    %94 = memref.load %arg7[%c6_30] : memref<8xf32, #tpu.memory_space<smem>>
    %c7_31 = arith.constant 7 : index
    %95 = memref.load %arg7[%c7_31] : memref<8xf32, #tpu.memory_space<smem>>
    %c0_32 = arith.constant 0 : index
    %96 = memref.load %arg8[%c0_32] : memref<1xf32, #tpu.memory_space<smem>>
    %c0_33 = arith.constant 0 : index
    %97 = memref.load %arg2[%c0_33] : memref<1xi32, #tpu.memory_space<smem>>
    %c32_i32 = arith.constant 32 : i32
    %98 = arith.muli %arg0, %c32_i32 : i32
    %c0_i32 = arith.constant 0 : i32
    %c32_i32_34 = arith.constant 32 : i32
    %99 = arith.muli %c0_i32, %c32_i32_34 : i32
    %100 = tpu.assume_multiple %99, 32 : i32
    %101 = arith.addi %98, %100 : i32
    %102 = arith.cmpi slt, %101, %97 : i32
    %103 = arith.extui %102 : i1 to i32
    %c0_i32_35 = arith.constant 0 : i32
    %104 = arith.cmpi ne, %103, %c0_i32_35 : i32
    scf.if %104 {
      %105 = arith.index_cast %100 : i32 to index
      %c0_36 = arith.constant 0 : index
      %106 = vector.load %arg1[%105, %c0_36] : memref<32x128xf32, #tpu.memory_space<vmem>>, vector<32x128xf32>
      %107 = vector.broadcast %0 : f32 to vector<32x128xf32>
      %108 = arith.mulf %106, %107 : vector<32x128xf32>
      %109 = vector.broadcast %8 : f32 to vector<32x128xf32>
      %110 = arith.addf %108, %109 : vector<32x128xf32>
      %cst = arith.constant 0.000000e+00 : f32
      %111 = vector.broadcast %cst : f32 to vector<32x128xf32>
      %112 = arith.maximumf %110, %111 : vector<32x128xf32>
      %113 = vector.broadcast %16 : f32 to vector<32x128xf32>
      %114 = arith.mulf %112, %113 : vector<32x128xf32>
      %115 = vector.broadcast %80 : f32 to vector<32x128xf32>
      %116 = arith.addf %114, %115 : vector<32x128xf32>
      %117 = vector.broadcast %17 : f32 to vector<32x128xf32>
      %118 = arith.mulf %112, %117 : vector<32x128xf32>
      %119 = vector.broadcast %81 : f32 to vector<32x128xf32>
      %120 = arith.addf %118, %119 : vector<32x128xf32>
      %121 = vector.broadcast %18 : f32 to vector<32x128xf32>
      %122 = arith.mulf %112, %121 : vector<32x128xf32>
      %123 = vector.broadcast %82 : f32 to vector<32x128xf32>
      %124 = arith.addf %122, %123 : vector<32x128xf32>
      %125 = vector.broadcast %19 : f32 to vector<32x128xf32>
      %126 = arith.mulf %112, %125 : vector<32x128xf32>
      %127 = vector.broadcast %83 : f32 to vector<32x128xf32>
      %128 = arith.addf %126, %127 : vector<32x128xf32>
      %129 = vector.broadcast %20 : f32 to vector<32x128xf32>
      %130 = arith.mulf %112, %129 : vector<32x128xf32>
      %131 = vector.broadcast %84 : f32 to vector<32x128xf32>
      %132 = arith.addf %130, %131 : vector<32x128xf32>
      %133 = vector.broadcast %21 : f32 to vector<32x128xf32>
      %134 = arith.mulf %112, %133 : vector<32x128xf32>
      %135 = vector.broadcast %85 : f32 to vector<32x128xf32>
      %136 = arith.addf %134, %135 : vector<32x128xf32>
      %137 = vector.broadcast %22 : f32 to vector<32x128xf32>
      %138 = arith.mulf %112, %137 : vector<32x128xf32>
      %139 = vector.broadcast %86 : f32 to vector<32x128xf32>
      %140 = arith.addf %138, %139 : vector<32x128xf32>
      %141 = vector.broadcast %23 : f32 to vector<32x128xf32>
      %142 = arith.mulf %112, %141 : vector<32x128xf32>
      %143 = vector.broadcast %87 : f32 to vector<32x128xf32>
      %144 = arith.addf %142, %143 : vector<32x128xf32>
      %145 = vector.broadcast %1 : f32 to vector<32x128xf32>
      %146 = arith.mulf %106, %145 : vector<32x128xf32>
      %147 = vector.broadcast %9 : f32 to vector<32x128xf32>
      %148 = arith.addf %146, %147 : vector<32x128xf32>
      %cst_37 = arith.constant 0.000000e+00 : f32
      %149 = vector.broadcast %cst_37 : f32 to vector<32x128xf32>
      %150 = arith.maximumf %148, %149 : vector<32x128xf32>
      %151 = vector.broadcast %24 : f32 to vector<32x128xf32>
      %152 = arith.mulf %150, %151 : vector<32x128xf32>
      %153 = arith.addf %116, %152 : vector<32x128xf32>
      %154 = vector.broadcast %25 : f32 to vector<32x128xf32>
      %155 = arith.mulf %150, %154 : vector<32x128xf32>
      %156 = arith.addf %120, %155 : vector<32x128xf32>
      %157 = vector.broadcast %26 : f32 to vector<32x128xf32>
      %158 = arith.mulf %150, %157 : vector<32x128xf32>
      %159 = arith.addf %124, %158 : vector<32x128xf32>
      %160 = vector.broadcast %27 : f32 to vector<32x128xf32>
      %161 = arith.mulf %150, %160 : vector<32x128xf32>
      %162 = arith.addf %128, %161 : vector<32x128xf32>
      %163 = vector.broadcast %28 : f32 to vector<32x128xf32>
      %164 = arith.mulf %150, %163 : vector<32x128xf32>
      %165 = arith.addf %132, %164 : vector<32x128xf32>
      %166 = vector.broadcast %29 : f32 to vector<32x128xf32>
      %167 = arith.mulf %150, %166 : vector<32x128xf32>
      %168 = arith.addf %136, %167 : vector<32x128xf32>
      %169 = vector.broadcast %30 : f32 to vector<32x128xf32>
      %170 = arith.mulf %150, %169 : vector<32x128xf32>
      %171 = arith.addf %140, %170 : vector<32x128xf32>
      %172 = vector.broadcast %31 : f32 to vector<32x128xf32>
      %173 = arith.mulf %150, %172 : vector<32x128xf32>
      %174 = arith.addf %144, %173 : vector<32x128xf32>
      %175 = vector.broadcast %2 : f32 to vector<32x128xf32>
      %176 = arith.mulf %106, %175 : vector<32x128xf32>
      %177 = vector.broadcast %10 : f32 to vector<32x128xf32>
      %178 = arith.addf %176, %177 : vector<32x128xf32>
      %cst_38 = arith.constant 0.000000e+00 : f32
      %179 = vector.broadcast %cst_38 : f32 to vector<32x128xf32>
      %180 = arith.maximumf %178, %179 : vector<32x128xf32>
      %181 = vector.broadcast %32 : f32 to vector<32x128xf32>
      %182 = arith.mulf %180, %181 : vector<32x128xf32>
      %183 = arith.addf %153, %182 : vector<32x128xf32>
      %184 = vector.broadcast %33 : f32 to vector<32x128xf32>
      %185 = arith.mulf %180, %184 : vector<32x128xf32>
      %186 = arith.addf %156, %185 : vector<32x128xf32>
      %187 = vector.broadcast %34 : f32 to vector<32x128xf32>
      %188 = arith.mulf %180, %187 : vector<32x128xf32>
      %189 = arith.addf %159, %188 : vector<32x128xf32>
      %190 = vector.broadcast %35 : f32 to vector<32x128xf32>
      %191 = arith.mulf %180, %190 : vector<32x128xf32>
      %192 = arith.addf %162, %191 : vector<32x128xf32>
      %193 = vector.broadcast %36 : f32 to vector<32x128xf32>
      %194 = arith.mulf %180, %193 : vector<32x128xf32>
      %195 = arith.addf %165, %194 : vector<32x128xf32>
      %196 = vector.broadcast %37 : f32 to vector<32x128xf32>
      %197 = arith.mulf %180, %196 : vector<32x128xf32>
      %198 = arith.addf %168, %197 : vector<32x128xf32>
      %199 = vector.broadcast %38 : f32 to vector<32x128xf32>
      %200 = arith.mulf %180, %199 : vector<32x128xf32>
      %201 = arith.addf %171, %200 : vector<32x128xf32>
      %202 = vector.broadcast %39 : f32 to vector<32x128xf32>
      %203 = arith.mulf %180, %202 : vector<32x128xf32>
      %204 = arith.addf %174, %203 : vector<32x128xf32>
      %205 = vector.broadcast %3 : f32 to vector<32x128xf32>
      %206 = arith.mulf %106, %205 : vector<32x128xf32>
      %207 = vector.broadcast %11 : f32 to vector<32x128xf32>
      %208 = arith.addf %206, %207 : vector<32x128xf32>
      %cst_39 = arith.constant 0.000000e+00 : f32
      %209 = vector.broadcast %cst_39 : f32 to vector<32x128xf32>
      %210 = arith.maximumf %208, %209 : vector<32x128xf32>
      %211 = vector.broadcast %40 : f32 to vector<32x128xf32>
      %212 = arith.mulf %210, %211 : vector<32x128xf32>
      %213 = arith.addf %183, %212 : vector<32x128xf32>
      %214 = vector.broadcast %41 : f32 to vector<32x128xf32>
      %215 = arith.mulf %210, %214 : vector<32x128xf32>
      %216 = arith.addf %186, %215 : vector<32x128xf32>
      %217 = vector.broadcast %42 : f32 to vector<32x128xf32>
      %218 = arith.mulf %210, %217 : vector<32x128xf32>
      %219 = arith.addf %189, %218 : vector<32x128xf32>
      %220 = vector.broadcast %43 : f32 to vector<32x128xf32>
      %221 = arith.mulf %210, %220 : vector<32x128xf32>
      %222 = arith.addf %192, %221 : vector<32x128xf32>
      %223 = vector.broadcast %44 : f32 to vector<32x128xf32>
      %224 = arith.mulf %210, %223 : vector<32x128xf32>
      %225 = arith.addf %195, %224 : vector<32x128xf32>
      %226 = vector.broadcast %45 : f32 to vector<32x128xf32>
      %227 = arith.mulf %210, %226 : vector<32x128xf32>
      %228 = arith.addf %198, %227 : vector<32x128xf32>
      %229 = vector.broadcast %46 : f32 to vector<32x128xf32>
      %230 = arith.mulf %210, %229 : vector<32x128xf32>
      %231 = arith.addf %201, %230 : vector<32x128xf32>
      %232 = vector.broadcast %47 : f32 to vector<32x128xf32>
      %233 = arith.mulf %210, %232 : vector<32x128xf32>
      %234 = arith.addf %204, %233 : vector<32x128xf32>
      %235 = vector.broadcast %4 : f32 to vector<32x128xf32>
      %236 = arith.mulf %106, %235 : vector<32x128xf32>
      %237 = vector.broadcast %12 : f32 to vector<32x128xf32>
      %238 = arith.addf %236, %237 : vector<32x128xf32>
      %cst_40 = arith.constant 0.000000e+00 : f32
      %239 = vector.broadcast %cst_40 : f32 to vector<32x128xf32>
      %240 = arith.maximumf %238, %239 : vector<32x128xf32>
      %241 = vector.broadcast %48 : f32 to vector<32x128xf32>
      %242 = arith.mulf %240, %241 : vector<32x128xf32>
      %243 = arith.addf %213, %242 : vector<32x128xf32>
      %244 = vector.broadcast %49 : f32 to vector<32x128xf32>
      %245 = arith.mulf %240, %244 : vector<32x128xf32>
      %246 = arith.addf %216, %245 : vector<32x128xf32>
      %247 = vector.broadcast %50 : f32 to vector<32x128xf32>
      %248 = arith.mulf %240, %247 : vector<32x128xf32>
      %249 = arith.addf %219, %248 : vector<32x128xf32>
      %250 = vector.broadcast %51 : f32 to vector<32x128xf32>
      %251 = arith.mulf %240, %250 : vector<32x128xf32>
      %252 = arith.addf %222, %251 : vector<32x128xf32>
      %253 = vector.broadcast %52 : f32 to vector<32x128xf32>
      %254 = arith.mulf %240, %253 : vector<32x128xf32>
      %255 = arith.addf %225, %254 : vector<32x128xf32>
      %256 = vector.broadcast %53 : f32 to vector<32x128xf32>
      %257 = arith.mulf %240, %256 : vector<32x128xf32>
      %258 = arith.addf %228, %257 : vector<32x128xf32>
      %259 = vector.broadcast %54 : f32 to vector<32x128xf32>
      %260 = arith.mulf %240, %259 : vector<32x128xf32>
      %261 = arith.addf %231, %260 : vector<32x128xf32>
      %262 = vector.broadcast %55 : f32 to vector<32x128xf32>
      %263 = arith.mulf %240, %262 : vector<32x128xf32>
      %264 = arith.addf %234, %263 : vector<32x128xf32>
      %265 = vector.broadcast %5 : f32 to vector<32x128xf32>
      %266 = arith.mulf %106, %265 : vector<32x128xf32>
      %267 = vector.broadcast %13 : f32 to vector<32x128xf32>
      %268 = arith.addf %266, %267 : vector<32x128xf32>
      %cst_41 = arith.constant 0.000000e+00 : f32
      %269 = vector.broadcast %cst_41 : f32 to vector<32x128xf32>
      %270 = arith.maximumf %268, %269 : vector<32x128xf32>
      %271 = vector.broadcast %56 : f32 to vector<32x128xf32>
      %272 = arith.mulf %270, %271 : vector<32x128xf32>
      %273 = arith.addf %243, %272 : vector<32x128xf32>
      %274 = vector.broadcast %57 : f32 to vector<32x128xf32>
      %275 = arith.mulf %270, %274 : vector<32x128xf32>
      %276 = arith.addf %246, %275 : vector<32x128xf32>
      %277 = vector.broadcast %58 : f32 to vector<32x128xf32>
      %278 = arith.mulf %270, %277 : vector<32x128xf32>
      %279 = arith.addf %249, %278 : vector<32x128xf32>
      %280 = vector.broadcast %59 : f32 to vector<32x128xf32>
      %281 = arith.mulf %270, %280 : vector<32x128xf32>
      %282 = arith.addf %252, %281 : vector<32x128xf32>
      %283 = vector.broadcast %60 : f32 to vector<32x128xf32>
      %284 = arith.mulf %270, %283 : vector<32x128xf32>
      %285 = arith.addf %255, %284 : vector<32x128xf32>
      %286 = vector.broadcast %61 : f32 to vector<32x128xf32>
      %287 = arith.mulf %270, %286 : vector<32x128xf32>
      %288 = arith.addf %258, %287 : vector<32x128xf32>
      %289 = vector.broadcast %62 : f32 to vector<32x128xf32>
      %290 = arith.mulf %270, %289 : vector<32x128xf32>
      %291 = arith.addf %261, %290 : vector<32x128xf32>
      %292 = vector.broadcast %63 : f32 to vector<32x128xf32>
      %293 = arith.mulf %270, %292 : vector<32x128xf32>
      %294 = arith.addf %264, %293 : vector<32x128xf32>
      %295 = vector.broadcast %6 : f32 to vector<32x128xf32>
      %296 = arith.mulf %106, %295 : vector<32x128xf32>
      %297 = vector.broadcast %14 : f32 to vector<32x128xf32>
      %298 = arith.addf %296, %297 : vector<32x128xf32>
      %cst_42 = arith.constant 0.000000e+00 : f32
      %299 = vector.broadcast %cst_42 : f32 to vector<32x128xf32>
      %300 = arith.maximumf %298, %299 : vector<32x128xf32>
      %301 = vector.broadcast %64 : f32 to vector<32x128xf32>
      %302 = arith.mulf %300, %301 : vector<32x128xf32>
      %303 = arith.addf %273, %302 : vector<32x128xf32>
      %304 = vector.broadcast %65 : f32 to vector<32x128xf32>
      %305 = arith.mulf %300, %304 : vector<32x128xf32>
      %306 = arith.addf %276, %305 : vector<32x128xf32>
      %307 = vector.broadcast %66 : f32 to vector<32x128xf32>
      %308 = arith.mulf %300, %307 : vector<32x128xf32>
      %309 = arith.addf %279, %308 : vector<32x128xf32>
      %310 = vector.broadcast %67 : f32 to vector<32x128xf32>
      %311 = arith.mulf %300, %310 : vector<32x128xf32>
      %312 = arith.addf %282, %311 : vector<32x128xf32>
      %313 = vector.broadcast %68 : f32 to vector<32x128xf32>
      %314 = arith.mulf %300, %313 : vector<32x128xf32>
      %315 = arith.addf %285, %314 : vector<32x128xf32>
      %316 = vector.broadcast %69 : f32 to vector<32x128xf32>
      %317 = arith.mulf %300, %316 : vector<32x128xf32>
      %318 = arith.addf %288, %317 : vector<32x128xf32>
      %319 = vector.broadcast %70 : f32 to vector<32x128xf32>
      %320 = arith.mulf %300, %319 : vector<32x128xf32>
      %321 = arith.addf %291, %320 : vector<32x128xf32>
      %322 = vector.broadcast %71 : f32 to vector<32x128xf32>
      %323 = arith.mulf %300, %322 : vector<32x128xf32>
      %324 = arith.addf %294, %323 : vector<32x128xf32>
      %325 = vector.broadcast %7 : f32 to vector<32x128xf32>
      %326 = arith.mulf %106, %325 : vector<32x128xf32>
      %327 = vector.broadcast %15 : f32 to vector<32x128xf32>
      %328 = arith.addf %326, %327 : vector<32x128xf32>
      %cst_43 = arith.constant 0.000000e+00 : f32
      %329 = vector.broadcast %cst_43 : f32 to vector<32x128xf32>
      %330 = arith.maximumf %328, %329 : vector<32x128xf32>
      %331 = vector.broadcast %72 : f32 to vector<32x128xf32>
      %332 = arith.mulf %330, %331 : vector<32x128xf32>
      %333 = arith.addf %303, %332 : vector<32x128xf32>
      %334 = vector.broadcast %73 : f32 to vector<32x128xf32>
      %335 = arith.mulf %330, %334 : vector<32x128xf32>
      %336 = arith.addf %306, %335 : vector<32x128xf32>
      %337 = vector.broadcast %74 : f32 to vector<32x128xf32>
      %338 = arith.mulf %330, %337 : vector<32x128xf32>
      %339 = arith.addf %309, %338 : vector<32x128xf32>
      %340 = vector.broadcast %75 : f32 to vector<32x128xf32>
      %341 = arith.mulf %330, %340 : vector<32x128xf32>
      %342 = arith.addf %312, %341 : vector<32x128xf32>
      %343 = vector.broadcast %76 : f32 to vector<32x128xf32>
      %344 = arith.mulf %330, %343 : vector<32x128xf32>
      %345 = arith.addf %315, %344 : vector<32x128xf32>
      %346 = vector.broadcast %77 : f32 to vector<32x128xf32>
      %347 = arith.mulf %330, %346 : vector<32x128xf32>
      %348 = arith.addf %318, %347 : vector<32x128xf32>
      %349 = vector.broadcast %78 : f32 to vector<32x128xf32>
      %350 = arith.mulf %330, %349 : vector<32x128xf32>
      %351 = arith.addf %321, %350 : vector<32x128xf32>
      %352 = vector.broadcast %79 : f32 to vector<32x128xf32>
      %353 = arith.mulf %330, %352 : vector<32x128xf32>
      %354 = arith.addf %324, %353 : vector<32x128xf32>
      %cst_44 = arith.constant 0.000000e+00 : f32
      %355 = vector.broadcast %cst_44 : f32 to vector<32x128xf32>
      %356 = arith.maximumf %333, %355 : vector<32x128xf32>
      %357 = vector.broadcast %88 : f32 to vector<32x128xf32>
      %358 = arith.mulf %356, %357 : vector<32x128xf32>
      %359 = vector.broadcast %96 : f32 to vector<32x128xf32>
      %360 = arith.addf %358, %359 : vector<32x128xf32>
      %cst_45 = arith.constant 0.000000e+00 : f32
      %361 = vector.broadcast %cst_45 : f32 to vector<32x128xf32>
      %362 = arith.maximumf %336, %361 : vector<32x128xf32>
      %363 = vector.broadcast %89 : f32 to vector<32x128xf32>
      %364 = arith.mulf %362, %363 : vector<32x128xf32>
      %365 = arith.addf %360, %364 : vector<32x128xf32>
      %cst_46 = arith.constant 0.000000e+00 : f32
      %366 = vector.broadcast %cst_46 : f32 to vector<32x128xf32>
      %367 = arith.maximumf %339, %366 : vector<32x128xf32>
      %368 = vector.broadcast %90 : f32 to vector<32x128xf32>
      %369 = arith.mulf %367, %368 : vector<32x128xf32>
      %370 = arith.addf %365, %369 : vector<32x128xf32>
      %cst_47 = arith.constant 0.000000e+00 : f32
      %371 = vector.broadcast %cst_47 : f32 to vector<32x128xf32>
      %372 = arith.maximumf %342, %371 : vector<32x128xf32>
      %373 = vector.broadcast %91 : f32 to vector<32x128xf32>
      %374 = arith.mulf %372, %373 : vector<32x128xf32>
      %375 = arith.addf %370, %374 : vector<32x128xf32>
      %cst_48 = arith.constant 0.000000e+00 : f32
      %376 = vector.broadcast %cst_48 : f32 to vector<32x128xf32>
      %377 = arith.maximumf %345, %376 : vector<32x128xf32>
      %378 = vector.broadcast %92 : f32 to vector<32x128xf32>
      %379 = arith.mulf %377, %378 : vector<32x128xf32>
      %380 = arith.addf %375, %379 : vector<32x128xf32>
      %cst_49 = arith.constant 0.000000e+00 : f32
      %381 = vector.broadcast %cst_49 : f32 to vector<32x128xf32>
      %382 = arith.maximumf %348, %381 : vector<32x128xf32>
      %383 = vector.broadcast %93 : f32 to vector<32x128xf32>
      %384 = arith.mulf %382, %383 : vector<32x128xf32>
      %385 = arith.addf %380, %384 : vector<32x128xf32>
      %cst_50 = arith.constant 0.000000e+00 : f32
      %386 = vector.broadcast %cst_50 : f32 to vector<32x128xf32>
      %387 = arith.maximumf %351, %386 : vector<32x128xf32>
      %388 = vector.broadcast %94 : f32 to vector<32x128xf32>
      %389 = arith.mulf %387, %388 : vector<32x128xf32>
      %390 = arith.addf %385, %389 : vector<32x128xf32>
      %cst_51 = arith.constant 0.000000e+00 : f32
      %391 = vector.broadcast %cst_51 : f32 to vector<32x128xf32>
      %392 = arith.maximumf %354, %391 : vector<32x128xf32>
      %393 = vector.broadcast %95 : f32 to vector<32x128xf32>
      %394 = arith.mulf %392, %393 : vector<32x128xf32>
      %395 = arith.addf %390, %394 : vector<32x128xf32>
      %396 = arith.index_cast %100 : i32 to index
      %c0_52 = arith.constant 0 : index
      %397 = vector.load %arg9[%396, %c0_52] : memref<32x128xf32, #tpu.memory_space<vmem>>, vector<32x128xf32>
      tpu.vector_store %arg9[%396, %c0_52], %395 {strides = array<i32>} : memref<32x128xf32, #tpu.memory_space<vmem>>, vector<32x128xf32>,
    } else {
    }
    %c1_i32 = arith.constant 1 : i32
    return
  }
  func.func @transform_0(%arg0: i32) -> (i32, i32) {
    %c0_i32 = arith.constant 0 : i32
    %c0_i32_0 = arith.constant 0 : i32
    return %arg0, %c0_i32 : i32, i32
  }
  func.func @transform_1(%arg0: i32) -> i32 {
    %c0_i32 = arith.constant 0 : i32
    %c0_i32_0 = arith.constant 0 : i32
    return %c0_i32 : i32
  }
  func.func @transform_2(%arg0: i32) -> i32 {
    %c0_i32 = arith.constant 0 : i32
    %c0_i32_0 = arith.constant 0 : i32
    return %c0_i32 : i32
  }
  func.func @transform_3(%arg0: i32) -> i32 {
    %c0_i32 = arith.constant 0 : i32
    %c0_i32_0 = arith.constant 0 : i32
    return %c0_i32 : i32
  }
  func.func @transform_4(%arg0: i32) -> i32 {
    %c0_i32 = arith.constant 0 : i32
    %c0_i32_0 = arith.constant 0 : i32
    return %c0_i32 : i32
  }
  func.func @transform_5(%arg0: i32) -> i32 {
    %c0_i32 = arith.constant 0 : i32
    %c0_i32_0 = arith.constant 0 : i32
    return %c0_i32 : i32
  }
  func.func @transform_6(%arg0: i32) -> i32 {
    %c0_i32 = arith.constant 0 : i32
    %c0_i32_0 = arith.constant 0 : i32
    return %c0_i32 : i32
  }
  func.func @transform_7(%arg0: i32) -> i32 {
    %c0_i32 = arith.constant 0 : i32
    %c0_i32_0 = arith.constant 0 : i32
    return %c0_i32 : i32
  }
  func.func @transform_8(%arg0: i32) -> (i32, i32) {
    %c0_i32 = arith.constant 0 : i32
    %c0_i32_0 = arith.constant 0 : i32
    return %arg0, %c0_i32 : i32, i32
  }
}

</mosaic_0001>

<bundles_post_ra>
// kernel: tpu_custom_call.1
= control target key start
LH: loop header
LB: loop body
LE: loop exit
PB: predicated region body
PF: predicated region fallthrough
CT: control target
= control target key end

     0   :  { %s2590_s0 = inlined_call_operand.vmem [shape: f32[1,128], index: 0, kind: input, shape index: {}]   ;;  %s2591_s1 = inlined_call_operand.<no memory space> [shape: s32[1], index: 1, kind: input, shape index: {}]   ;;  %s2592_s2 = inlined_call_operand.vmem [shape: f32[8], index: 2, kind: input, shape index: {}]   ;;  %s2593_s3 = inlined_call_operand.vmem [shape: f32[8], index: 3, kind: input, shape index: {}]   ;;  %s2594_s4 = inlined_call_operand.vmem [shape: f32[64], index: 4, kind: input, shape index: {}]   ;;  %s2595_s5 = inlined_call_operand.vmem [shape: f32[8], index: 5, kind: input, shape index: {}]   ;;  %s2596_s6 = inlined_call_operand.vmem [shape: f32[8], index: 6, kind: input, shape index: {}]   ;;  %s2597_s7 = inlined_call_operand.<no memory space> [shape: f32[1], index: 7, kind: input, shape index: {}]   ;;  %s2598_s8 = inlined_call_operand.hbm [shape: f32[1,128], index: 8, kind: output, shape index: {}]  }
   0x1   :  { %2605 = sst [smem:[#allocation95_spill]] %s2597_s7 }
   0x2   :  { %2606 = sst [smem:[#allocation96_spill]] %s2598_s8 }
   0x3   :  { %15 = vsyncpa [#allocation6], 0 }
   0x4   :  { %16 = vsyncpa [#allocation8], 0 }
   0x5   :  { %17 = vsyncpa [#allocation11], 0  ;;  %s39_s29 = sshll.u32 %s2593_s3, 4  ;;  %s40_s29 = int_to_ptr.vmem [resolvable:$true] %s39_s29 }
   0x6   :  { %18 = vsyncpa [#allocation5], 0  ;;  %s59_s10 = sshll.u32 %s2595_s5, 4  ;;  %s1128_s11 = scalar_lea.vmem %s40_s29, 16  ;;  %s60_s10 = int_to_ptr.vmem [resolvable:$true] %s59_s10 }
   0x7   :  { %p1129_p0 = scmp.ne.s32.totalorder %s40_s29, %s1128_s11  ;;  %p1133_p1 = scmp.lt.s32.totalorder %s40_s29, %s40_s29 }
   0x8   :  { %p1134_p2 = scmp.lt.s32.totalorder %s1128_s11, %s1128_s11 }
   0xa   :  { %p1135_p3 = por %p1134_p2, %p1133_p1 }
   0xc   :  { %p1136_p4 = pnand %p1135_p3, %p1129_p0 }
   0xe   :  { %1139 = shalt.err (!%p1136_p4)
}
   0xf   :  { %s1216_s12 = smov [#allocation7]   ;;  %s1140_s13 = scalar_lea.vmem %s60_s10, 16 }
  0x10   :  { %42 = dma.vmem_to_smem %s40_s29, 16, %s1216_s12, [#allocation8]  }
  0x11   :  { %p1141_p5 = scmp.ne.s32.totalorder %s60_s10, %s1140_s13  ;;  %p1145_p6 = scmp.lt.s32.totalorder %s60_s10, %s60_s10 }
  0x12   :  { %p1146_p7 = scmp.lt.s32.totalorder %s1140_s13, %s1140_s13 }
  0x14   :  { %p1147_p8 = por %p1146_p7, %p1145_p6 }
  0x16   :  { %p1148_p9 = pnand %p1147_p8, %p1141_p5 }
  0x18   :  { %1151 = shalt.err (!%p1148_p9)
}
  0x19   :  { %s1217_s3 = smov [#allocation10]   ;;  %s29_s15 = sshll.u32 %s2592_s2, 4  ;;  %s30_s15 = int_to_ptr.vmem [resolvable:$true] %s29_s15 }
  0x1a   :  { %62 = dma.vmem_to_smem %s60_s10, 16, %s1217_s3, [#allocation11]  }
  0x1b   :  { %s49_s18 = sshll.u32 %s2594_s4, 4  ;;  %s1152_s19 = scalar_lea.vmem %s30_s15, 16  ;;  %s50_s18 = int_to_ptr.vmem [resolvable:$true] %s49_s18 }
  0x1c   :  { %p1153_p10 = scmp.ne.s32.totalorder %s30_s15, %s1152_s19  ;;  %p1157_p11 = scmp.lt.s32.totalorder %s30_s15, %s30_s15 }
  0x1d   :  { %p1158_p12 = scmp.lt.s32.totalorder %s1152_s19, %s1152_s19 }
  0x1f   :  { %p1159_p13 = por %p1158_p12, %p1157_p11 }
  0x21   :  { %p1160_p0 = pnand %p1159_p13, %p1153_p10 }
  0x23   :  { %1163 = shalt.err (!%p1160_p0)
}
  0x24   :  { %s1218_s20 = smov [#allocation4]   ;;  %s1164_s21 = scalar_lea.vmem %s50_s18, 16 }
  0x25   :  { %32 = dma.vmem_to_smem %s30_s15, 16, %s1218_s20, [#allocation6]  }
  0x26   :  { %p1165_p1 = scmp.ne.s32.totalorder %s50_s18, %s1164_s21  ;;  %p1169_p2 = scmp.lt.s32.totalorder %s50_s18, %s50_s18 }
  0x27   :  { %p1170_p3 = scmp.lt.s32.totalorder %s1164_s21, %s1164_s21 }
  0x29   :  { %p1171_p4 = por %p1170_p3, %p1169_p2 }
  0x2b   :  { %p1172_p5 = pnand %p1171_p4, %p1165_p1 }
  0x2d   :  { %1175 = shalt.err (!%p1172_p5)
}
  0x2e   :  { %s1219_s2 = smov [#allocation9]   ;;  %s69_s23 = sshll.u32 %s2596_s6, 4  ;;  %s70_s23 = int_to_ptr.vmem [resolvable:$true] %s69_s23 }
  0x2f   :  { %52 = dma.vmem_to_smem %s50_s18, 16, %s1219_s2, [#allocation8]  }
  0x30   :  { %s1176_s24 = scalar_lea.vmem %s70_s23, 16  ;;  %p1181_p7 = scmp.lt.s32.totalorder %s70_s23, %s70_s23 }
  0x31   :  { %p1177_p6 = scmp.ne.s32.totalorder %s70_s23, %s1176_s24  ;;  %p1182_p8 = scmp.lt.s32.totalorder %s1176_s24, %s1176_s24 }
  0x33   :  { %p1183_p9 = por %p1182_p8, %p1181_p7 }
  0x35   :  { %p1184_p10 = pnand %p1183_p9, %p1177_p6 }
  0x37   :  { %1187 = shalt.err (!%p1184_p10)
}
  0x38   :  { %s1220_s25 = smov [#allocation12]  }
  0x39   :  { %72 = dma.vmem_to_smem %s70_s23, 16, %s1220_s25, [#allocation11]  }
  0x3a   :  { %1208 = dma.done.wait [#allocation6], 16  }
  0x3b   :  { %1209 = vsyncadd [#allocation6], 4294967280 }
  0x3c   :  { %1210 = dma.done.wait [#allocation8], 32  }
  0x3d   :  { %1211 = vsyncadd [#allocation8], 4294967264 }
  0x3e   :  { %1212 = dma.done.wait [#allocation11], 32  }
  0x3f   :  { %1213 = vsyncadd [#allocation11], 4294967264 }
  0x40   :  { %90 = sfence }
  0x41   :  { %s1284_s26 = sld [smem:[#allocation4]]  ;;  %p1115_p11 = scmp.le.s32.totalorder %s2591_s1, 0 }
  0x42   :  { %s1286_s6 = sld [smem:[#allocation4 + $0x1]] }
  0x43   :  { %s1288_s27 = sld [smem:[#allocation4 + $0x2]] }
  0x44   :  { %s1290_s28 = sld [smem:[#allocation4 + $0x3]] }
  0x45   :  { %s1292_s29 = sld [smem:[#allocation4 + $0x4]] }
  0x46   :  { %s1294_s30 = sld [smem:[#allocation4 + $0x5]] }
  0x47   :  { %s1296_s9 = sld [smem:[#allocation4 + $0x6]] }
  0x48   :  { %2607 = sst [smem:[#allocation18_spill]] %s1286_s6 }
  0x49   :  { %2608 = sst [smem:[#allocation19_spill]] %s1288_s27 }
  0x4a   :  { %2609 = sst [smem:[#allocation20_spill]] %s1290_s28 }
  0x4b   :  { %2610 = sst [smem:[#allocation21_spill]] %s1292_s29 }
  0x4c   :  { %2611 = sst [smem:[#allocation22_spill]] %s1294_s30 }
  0x4d   :  { %2612 = sst [smem:[#allocation23_spill]] %s1296_s9 }
  0x4e   :  { %s1298_s10 = sld [smem:[#allocation4 + $0x7]] }
  0x4f   :  { %s1300_s11 = sld [smem:[#allocation7]] }
  0x50   :  { %s1302_s12 = sld [smem:[#allocation7 + $0x1]] }
  0x51   :  { %s1304_s13 = sld [smem:[#allocation7 + $0x2]] }
  0x52   :  { %s1306_s3 = sld [smem:[#allocation7 + $0x3]] }
  0x53   :  { %s1308_s5 = sld [smem:[#allocation7 + $0x4]] }
  0x54   :  { %2613 = sst [smem:[#allocation24_spill]] %s1298_s10 }
  0x55   :  { %s1310_s14 = sld [smem:[#allocation7 + $0x5]] }
  0x56   :  { %2614 = sst [smem:[#allocation25_spill]] %s1302_s12 }
  0x57   :  { %2615 = sst [smem:[#allocation26_spill]] %s1304_s13 }
  0x58   :  { %2616 = sst [smem:[#allocation27_spill]] %s1306_s3 }
  0x59   :  { %2617 = sst [smem:[#allocation28_spill]] %s1308_s5 }
  0x5a   :  { %s1312_s15 = sld [smem:[#allocation7 + $0x6]] }
  0x5b   :  { %2618 = sst [smem:[#allocation29_spill]] %s1310_s14 }
  0x5c   :  { %s1314_s16 = sld [smem:[#allocation7 + $0x7]] }
  0x5d   :  { %s1316_s17 = sld [smem:[#allocation9]] }
  0x5e   :  { %s1318_s18 = sld [smem:[#allocation9 + $0x1]] }
  0x5f   :  { %s1320_s19 = sld [smem:[#allocation9 + $0x2]] }
  0x60   :  { %2619 = sst [smem:[#allocation30_spill]] %s1312_s15 }
  0x61   :  { %s1322_s20 = sld [smem:[#allocation9 + $0x3]] }
  0x62   :  { %2620 = sst [smem:[#allocation31_spill]] %s1314_s16 }
  0x63   :  { %s1324_s21 = sld [smem:[#allocation9 + $0x4]] }
  0x64   :  { %s1326_s2 = sld [smem:[#allocation9 + $0x5]] }
  0x65   :  { %s1328_s4 = sld [smem:[#allocation9 + $0x6]] }
  0x66   :  { %s1330_s22 = sld [smem:[#allocation9 + $0x7]] }
  0x67   :  { %s1332_s23 = sld [smem:[#allocation9 + $0x8]] }
  0x68   :  { %s1334_s24 = sld [smem:[#allocation9 + $0x9]] }
  0x69   :  { %s1336_s25 = sld [smem:[#allocation9 + $0xa]] }
  0x6a   :  { %s1338_s8 = sld [smem:[#allocation9 + $0xb]] }
  0x6b   :  { %s1340_s7 = sld [smem:[#allocation9 + $0xc]] }
  0x6c   :  { %s1342_s16 = sld [smem:[#allocation9 + $0xd]] }
  0x6d   :  { %2621 = sst [smem:[#allocation32_spill]] %s1332_s23 }
  0x6e   :  { %2622 = sst [smem:[#allocation33_spill]] %s1334_s24 }
  0x6f   :  { %2623 = sst [smem:[#allocation34_spill]] %s1336_s25 }
  0x70   :  { %2624 = sst [smem:[#allocation35_spill]] %s1338_s8 }
  0x71   :  { %2625 = sst [smem:[#allocation36_spill]] %s1340_s7 }
  0x72   :  { %2626 = sst [smem:[#allocation37_spill]] %s1342_s16 }
  0x73   :  { %s1344_s10 = sld [smem:[#allocation9 + $0xe]] }
  0x74   :  { %s1346_s15 = sld [smem:[#allocation9 + $0xf]] }
  0x75   :  { %s1348_s9 = sld [smem:[#allocation9 + $0x10]] }
  0x76   :  { %s1350_s14 = sld [smem:[#allocation9 + $0x11]] }
  0x77   :  { %s1352_s30 = sld [smem:[#allocation9 + $0x12]] }
  0x78   :  { %s1354_s5 = sld [smem:[#allocation9 + $0x13]] }
  0x79   :  { %2627 = sst [smem:[#allocation38_spill]] %s1344_s10 }
  0x7a   :  { %2628 = sst [smem:[#allocation39_spill]] %s1346_s15 }
  0x7b   :  { %2629 = sst [smem:[#allocation40_spill]] %s1348_s9 }
  0x7c   :  { %2630 = sst [smem:[#allocation41_spill]] %s1350_s14 }
  0x7d   :  { %2631 = sst [smem:[#allocation42_spill]] %s1352_s30 }
  0x7e   :  { %2632 = sst [smem:[#allocation43_spill]] %s1354_s5 }
  0x7f   :  { %s1356_s29 = sld [smem:[#allocation9 + $0x14]] }
  0x80   :  { %s1358_s3 = sld [smem:[#allocation9 + $0x15]] }
  0x81   :  { %s1360_s28 = sld [smem:[#allocation9 + $0x16]] }
  0x82   :  { %s1362_s13 = sld [smem:[#allocation9 + $0x17]] }
  0x83   :  { %s1364_s27 = sld [smem:[#allocation9 + $0x18]] }
  0x84   :  { %s1366_s10 = sld [smem:[#allocation9 + $0x19]] }
  0x85   :  { %2633 = sst [smem:[#allocation44_spill]] %s1356_s29 }
  0x86   :  { %2634 = sst [smem:[#allocation45_spill]] %s1358_s3 }
  0x87   :  { %2635 = sst [smem:[#allocation46_spill]] %s1360_s28 }
  0x88   :  { %2636 = sst [smem:[#allocation47_spill]] %s1362_s13 }
  0x89   :  { %2637 = sst [smem:[#allocation48_spill]] %s1364_s27 }
  0x8a   :  { %2638 = sst [smem:[#allocation49_spill]] %s1366_s10 }
  0x8b   :  { %s1368_s15 = sld [smem:[#allocation9 + $0x1a]] }
  0x8c   :  { %s1370_s9 = sld [smem:[#allocation9 + $0x1b]] }
  0x8d   :  { %s1372_s14 = sld [smem:[#allocation9 + $0x1c]] }
  0x8e   :  { %s1374_s30 = sld [smem:[#allocation9 + $0x1d]] }
  0x8f   :  { %s1376_s5 = sld [smem:[#allocation9 + $0x1e]] }
  0x90   :  { %s1378_s29 = sld [smem:[#allocation9 + $0x1f]] }
  0x91   :  { %2639 = sst [smem:[#allocation50_spill]] %s1368_s15 }
  0x92   :  { %2640 = sst [smem:[#allocation51_spill]] %s1370_s9 }
  0x93   :  { %2641 = sst [smem:[#allocation52_spill]] %s1372_s14 }
  0x94   :  { %2642 = sst [smem:[#allocation53_spill]] %s1374_s30 }
  0x95   :  { %2643 = sst [smem:[#allocation54_spill]] %s1376_s5 }
  0x96   :  { %2644 = sst [smem:[#allocation55_spill]] %s1378_s29 }
  0x97   :  { %s1380_s3 = sld [smem:[#allocation9 + $0x20]] }
  0x98   :  { %s1382_s28 = sld [smem:[#allocation9 + $0x21]] }
  0x99   :  { %s1384_s13 = sld [smem:[#allocation9 + $0x22]] }
  0x9a   :  { %s1386_s27 = sld [smem:[#allocation9 + $0x23]] }
  0x9b   :  { %s1388_s10 = sld [smem:[#allocation9 + $0x24]] }
  0x9c   :  { %s1390_s15 = sld [smem:[#allocation9 + $0x25]] }
  0x9d   :  { %2645 = sst [smem:[#allocation56_spill]] %s1380_s3 }
  0x9e   :  { %2646 = sst [smem:[#allocation57_spill]] %s1382_s28 }
  0x9f   :  { %2647 = sst [smem:[#allocation58_spill]] %s1384_s13 }
  0xa0   :  { %2648 = sst [smem:[#allocation59_spill]] %s1386_s27 }
  0xa1   :  { %2649 = sst [smem:[#allocation60_spill]] %s1388_s10 }
  0xa2   :  { %2650 = sst [smem:[#allocation61_spill]] %s1390_s15 }
  0xa3   :  { %s1392_s9 = sld [smem:[#allocation9 + $0x26]] }
  0xa4   :  { %s1394_s14 = sld [smem:[#allocation9 + $0x27]] }
  0xa5   :  { %s1396_s30 = sld [smem:[#allocation9 + $0x28]] }
  0xa6   :  { %s1398_s5 = sld [smem:[#allocation9 + $0x29]] }
  0xa7   :  { %s1400_s29 = sld [smem:[#allocation9 + $0x2a]] }
  0xa8   :  { %s1402_s3 = sld [smem:[#allocation9 + $0x2b]] }
  0xa9   :  { %2651 = sst [smem:[#allocation62_spill]] %s1392_s9 }
  0xaa   :  { %2652 = sst [smem:[#allocation63_spill]] %s1394_s14 }
  0xab   :  { %2653 = sst [smem:[#allocation64_spill]] %s1396_s30 }
  0xac   :  { %2654 = sst [smem:[#allocation65_spill]] %s1398_s5 }
  0xad   :  { %2655 = sst [smem:[#allocation66_spill]] %s1400_s29 }
  0xae   :  { %2656 = sst [smem:[#allocation67_spill]] %s1402_s3 }
  0xaf   :  { %s1404_s28 = sld [smem:[#allocation9 + $0x2c]] }
  0xb0   :  { %s1406_s13 = sld [smem:[#allocation9 + $0x2d]] }
  0xb1   :  { %s1408_s27 = sld [smem:[#allocation9 + $0x2e]] }
  0xb2   :  { %s1410_s10 = sld [smem:[#allocation9 + $0x2f]] }
  0xb3   :  { %s1412_s15 = sld [smem:[#allocation9 + $0x30]] }
  0xb4   :  { %s1414_s9 = sld [smem:[#allocation9 + $0x31]] }
  0xb5   :  { %2657 = sst [smem:[#allocation68_spill]] %s1404_s28 }
  0xb6   :  { %2658 = sst [smem:[#allocation69_spill]] %s1406_s13 }
  0xb7   :  { %2659 = sst [smem:[#allocation70_spill]] %s1408_s27 }
  0xb8   :  { %2660 = sst [smem:[#allocation71_spill]] %s1410_s10 }
  0xb9   :  { %2661 = sst [smem:[#allocation72_spill]] %s1412_s15 }
  0xba   :  { %2662 = sst [smem:[#allocation73_spill]] %s1414_s9 }
  0xbb   :  { %s1416_s14 = sld [smem:[#allocation9 + $0x32]] }
  0xbc   :  { %s1418_s30 = sld [smem:[#allocation9 + $0x33]] }
  0xbd   :  { %s1420_s5 = sld [smem:[#allocation9 + $0x34]] }
  0xbe   :  { %s1422_s29 = sld [smem:[#allocation9 + $0x35]] }
  0xbf   :  { %s1424_s3 = sld [smem:[#allocation9 + $0x36]] }
  0xc0   :  { %s1426_s28 = sld [smem:[#allocation9 + $0x37]] }
  0xc1   :  { %2663 = sst [smem:[#allocation74_spill]] %s1416_s14 }
  0xc2   :  { %2664 = sst [smem:[#allocation75_spill]] %s1418_s30 }
  0xc3   :  { %2665 = sst [smem:[#allocation76_spill]] %s1420_s5 }
  0xc4   :  { %2666 = sst [smem:[#allocation77_spill]] %s1422_s29 }
  0xc5   :  { %2667 = sst [smem:[#allocation78_spill]] %s1424_s3 }
  0xc6   :  { %2668 = sst [smem:[#allocation79_spill]] %s1426_s28 }
  0xc7   :  { %s1428_s13 = sld [smem:[#allocation9 + $0x38]] }
  0xc8   :  { %s1430_s27 = sld [smem:[#allocation9 + $0x39]] }
  0xc9   :  { %s1432_s10 = sld [smem:[#allocation9 + $0x3a]] }
  0xca   :  { %s1434_s15 = sld [smem:[#allocation9 + $0x3b]] }
  0xcb   :  { %s1436_s9 = sld [smem:[#allocation9 + $0x3c]] }
  0xcc   :  { %s1438_s14 = sld [smem:[#allocation9 + $0x3d]] }
  0xcd   :  { %2669 = sst [smem:[#allocation80_spill]] %s1428_s13 }
  0xce   :  { %2670 = sst [smem:[#allocation81_spill]] %s1430_s27 }
  0xcf   :  { %2671 = sst [smem:[#allocation82_spill]] %s1432_s10 }
  0xd0   :  { %2672 = sst [smem:[#allocation83_spill]] %s1434_s15 }
  0xd1   :  { %2673 = sst [smem:[#allocation84_spill]] %s1436_s9 }
  0xd2   :  { %2674 = sst [smem:[#allocation85_spill]] %s1438_s14 }
  0xd3   :  { %s1440_s30 = sld [smem:[#allocation9 + $0x3e]] }
  0xd4   :  { %s1442_s5 = sld [smem:[#allocation9 + $0x3f]] }
  0xd5   :  { %s171_s29 = sld [smem:[#allocation10]] }
  0xd6   :  { %s1444_s3 = sld [smem:[#allocation10 + $0x1]] }
  0xd7   :  { %s1446_s28 = sld [smem:[#allocation10 + $0x2]] }
  0xd8   :  { %s1448_s13 = sld [smem:[#allocation10 + $0x3]] }
  0xd9   :  { %2675 = sst [smem:[#allocation86_spill]] %s1440_s30 }
  0xda   :  { %2676 = sst [smem:[#allocation87_spill]] %s1442_s5 }
  0xdb   :  { %s1450_s27 = sld [smem:[#allocation10 + $0x4]] }
  0xdc   :  { %s1452_s10 = sld [smem:[#allocation10 + $0x5]] }
  0xdd   :  { %s1454_s15 = sld [smem:[#allocation10 + $0x6]] }
  0xde   :  { %s1456_s9 = sld [smem:[#allocation10 + $0x7]] }
  0xdf   :  { %s1458_s14 = sld [smem:[#allocation12]] }
  0xe0   :  { %s1460_s30 = sld [smem:[#allocation12 + $0x1]] }
  0xe1   :  { %s1462_s5 = sld [smem:[#allocation12 + $0x2]] }
  0xe2   :  { %s1464_s16 = sld [smem:[#allocation12 + $0x3]] }
  0xe3   :  { %s1466_s7 = sld [smem:[#allocation12 + $0x4]] }
  0xe4   :  { %s1468_s8 = sld [smem:[#allocation12 + $0x5]] }
  0xe5   :  { %2677 = sst [smem:[#allocation88_spill]] %s1458_s14 }
  0xe6   :  { %s1470_s25 = sld [smem:[#allocation12 + $0x6]] }
  0xe7   :  { %s1472_s24 = sld [smem:[#allocation12 + $0x7]] }
  0xe9   :  { %2678 = sst [smem:[#allocation89_spill]] %s1466_s7  ;;  %194 = sbr.rel (%p1115_p11) target bundleno = 443 (0x1bb), region = 57 }
  0xea   :  { %2679 = sst [smem:[#allocation90_spill]] %s1468_s8 }
  0xec   :  { %2680 = sst [smem:[#allocation91_spill]] %s1470_s25 }
  0xed   :  { %2681 = sst [smem:[#allocation92_spill]] %s1472_s24 }
  0xee   :  { %v1480_v0 = vld [vmem:[%s2590_s0] sm:$0xff]  ;;  %v1485_v1 = vld [vmem:[%s2590_s0 + $0x8] sm:$0xff]  ;;  %v1490_v2 = vld [vmem:[%s2590_s0 + $0x10] sm:$0xff]  ;;  %v199_v3 = vstv %s1284_s26  ;;  %s2684_s7 = sld [smem:[#allocation18_spill]] }
  0xef   :  { %2682 = vst [vmem:[#allocation93_spill] sm:$0xff] %v1490_v2  ;;  %v1496_v4 = vld [vmem:[%s2590_s0 + $0x18] sm:$0xff]  ;;  %v200_v5 = vmul.f32 %v199_v3, %v1480_v0  ;;  %v201_v6 = vmul.f32 %v199_v3, %v1485_v1  ;;  %v202_v7 = vmul.f32 %v199_v3, %v1490_v2  ;;  %v204_v8 = vstv %s1300_s11  ;;  %s2685_s8 = sld [smem:[#allocation25_spill]] }
  0xf0   :  { %2683 = vst [vmem:[#allocation94_spill] sm:$0xff] %v1496_v4  ;;  %v203_v9 = vmul.f32 %v199_v3, %v1496_v4  ;;  %v213_v10 = vstv %s1316_s17  ;;  %v218_v11 = vstv %s171_s29  ;;  %v223_v12 = vstv %s1318_s18  ;;  %s2686_s26 = sld [smem:[#allocation32_spill]] }
  0xf1   :  { %v205_v13 = vadd.f32 %v204_v8, %v200_v5  ;;  %v206_v14 = vadd.f32 %v204_v8, %v201_v6  ;;  %v207_v15 = vadd.f32 %v204_v8, %v202_v7  ;;  %v228_v16 = vstv %s1444_s3  ;;  %s2689_s29 = sld [smem:[#allocation35_spill]] }
  0xf2   :  { %v208_v17 = vadd.f32 %v204_v8, %v203_v9  ;;  %v233_v18 = vstv %s1320_s19  ;;  %v238_v19 = vstv %s1446_s28  ;;  %v243_v20 = vstv %s1322_s20  ;;  %s2688_s28 = sld [smem:[#allocation34_spill]] }
  0xf3   :  { %v1509_v21 = vmax.f32 %v205_v13, 0.0  ;;  %v1511_v22 = vmax.f32 %v206_v14, 0.0  ;;  %v1513_v23 = vmax.f32 %v207_v15, 0.0  ;;  %v248_v24 = vstv %s1448_s13  ;;  %s2691_s11 = sld [smem:[#allocation37_spill]] }
  0xf4   :  { %v1516_v25 = vmax.f32 %v208_v17, 0.0  ;;  %v253_v26 = vstv %s1324_s21  ;;  %v258_v27 = vstv %s1450_s27  ;;  %v263_v28 = vstv %s1326_s2  ;;  %s2687_s27 = sld [smem:[#allocation33_spill]] }
  0xf5   :  { %v214_v29 = vmul.f32 %v213_v10, %v1509_v21  ;;  %v215_v30 = vmul.f32 %v213_v10, %v1511_v22  ;;  %v216_v31 = vmul.f32 %v213_v10, %v1513_v23  ;;  %v224_v32 = vmul.f32 %v223_v12, %v1509_v21  ;;  %s2692_s12 = sld [smem:[#allocation38_spill]] }
  0xf6   :  { %v217_v33 = vmul.f32 %v213_v10, %v1516_v25  ;;  %v225_v34 = vmul.f32 %v223_v12, %v1511_v22  ;;  %v226_v35 = vmul.f32 %v223_v12, %v1513_v23  ;;  %v227_v36 = vmul.f32 %v223_v12, %v1516_v25  ;;  %s2693_s13 = sld [smem:[#allocation39_spill]] }
  0xf7   :  { %v1529_v37 = vadd.f32 %v218_v11, %v214_v29  ;;  %v1531_v38 = vadd.f32 %v218_v11, %v215_v30  ;;  %v1533_v39 = vadd.f32 %v218_v11, %v216_v31  ;;  %v1535_v40 = vadd.f32 %v228_v16, %v224_v32  ;;  %s2694_s3 = sld [smem:[#allocation19_spill]] }
  0xf8   :  { %v1537_v41 = vadd.f32 %v218_v11, %v217_v33  ;;  %v1539_v42 = vadd.f32 %v228_v16, %v225_v34  ;;  %v1541_v43 = vadd.f32 %v228_v16, %v226_v35  ;;  %v1543_v44 = vadd.f32 %v228_v16, %v227_v36  ;;  %s2696_s14 = sld [smem:[#allocation40_spill]] }
  0xf9   :  { %v234_v45 = vmul.f32 %v233_v18, %v1509_v21  ;;  %v235_v46 = vmul.f32 %v233_v18, %v1511_v22  ;;  %v236_v47 = vmul.f32 %v233_v18, %v1513_v23  ;;  %v237_v48 = vmul.f32 %v233_v18, %v1516_v25  ;;  %s2698_s17 = sld [smem:[#allocation42_spill]] }
  0xfa   :  { %v244_v49 = vmul.f32 %v243_v20, %v1509_v21  ;;  %v245_v50 = vmul.f32 %v243_v20, %v1511_v22  ;;  %v246_v51 = vmul.f32 %v243_v20, %v1513_v23  ;;  %v247_v52 = vmul.f32 %v243_v20, %v1516_v25  ;;  %s2699_s18 = sld [smem:[#allocation43_spill]] }
  0xfb   :  { %v1553_v53 = vadd.f32 %v238_v19, %v234_v45  ;;  %v1555_v54 = vadd.f32 %v238_v19, %v235_v46  ;;  %v1557_v55 = vadd.f32 %v238_v19, %v236_v47  ;;  %v1559_v56 = vadd.f32 %v238_v19, %v237_v48  ;;  %s2700_s19 = sld [smem:[#allocation44_spill]] }
  0xfc   :  { %v1561_v57 = vadd.f32 %v248_v24, %v244_v49  ;;  %v1563_v58 = vadd.f32 %v248_v24, %v245_v50  ;;  %v1565_v59 = vadd.f32 %v248_v24, %v246_v51  ;;  %v1567_v60 = vadd.f32 %v248_v24, %v247_v52  ;;  %s2701_s20 = sld [smem:[#allocation45_spill]] }
  0xfd   :  { %v254_v61 = vmul.f32 %v253_v26, %v1509_v21  ;;  %v255_v62 = vmul.f32 %v253_v26, %v1511_v22  ;;  %v256_v63 = vmul.f32 %v253_v26, %v1513_v23  ;;  %v257_v3 = vmul.f32 %v253_v26, %v1516_v25  ;;  %s2702_s21 = sld [smem:[#allocation46_spill]] }
  0xfe   :  { %v264_v5 = vmul.f32 %v263_v28, %v1509_v21  ;;  %v265_v6 = vmul.f32 %v263_v28, %v1511_v22  ;;  %v266_v7 = vmul.f32 %v263_v28, %v1513_v23  ;;  %v267_v8 = vmul.f32 %v263_v28, %v1516_v25  ;;  %s2703_s2 = sld [smem:[#allocation47_spill]] }
  0xff   :  { %v1577_v9 = vadd.f32 %v258_v27, %v254_v61  ;;  %v1579_v10 = vadd.f32 %v258_v27, %v255_v62  ;;  %v1581_v11 = vadd.f32 %v258_v27, %v256_v63  ;;  %v1583_v12 = vadd.f32 %v258_v27, %v257_v3  ;;  %s2706_s23 = sld [smem:[#allocation48_spill]] }
 0x100   :  { %v268_v13 = vstv %s1452_s10  ;;  %v273_v14 = vstv %s1328_s4  ;;  %v278_v15 = vstv %s1454_s15  ;;  %v283_v16 = vstv %s1330_s22  ;;  %s2690_s10 = sld [smem:[#allocation36_spill]] }
 0x101   :  { %v1589_v17 = vadd.f32 %v268_v13, %v264_v5  ;;  %v1591_v18 = vadd.f32 %v268_v13, %v265_v6  ;;  %v1593_v19 = vadd.f32 %v268_v13, %v266_v7  ;;  %v1595_v20 = vadd.f32 %v268_v13, %v267_v8  ;;  %s2697_s15 = sld [smem:[#allocation41_spill]] }
 0x102   :  { %v274_v24 = vmul.f32 %v273_v14, %v1509_v21  ;;  %v275_v26 = vmul.f32 %v273_v14, %v1511_v22  ;;  %v276_v27 = vmul.f32 %v273_v14, %v1513_v23  ;;  %v277_v28 = vmul.f32 %v273_v14, %v1516_v25  ;;  %s2704_s4 = sld [smem:[#allocation20_spill]] }
 0x103   :  { %v284_v29 = vmul.f32 %v283_v16, %v1509_v21  ;;  %v285_v30 = vmul.f32 %v283_v16, %v1511_v22  ;;  %v286_v31 = vmul.f32 %v283_v16, %v1513_v23  ;;  %v287_v32 = vmul.f32 %v283_v16, %v1516_v25  ;;  %s2705_s22 = sld [smem:[#allocation27_spill]] }
 0x104   :  { %v1605_v33 = vadd.f32 %v278_v15, %v274_v24  ;;  %v1607_v34 = vadd.f32 %v278_v15, %v275_v26  ;;  %v1609_v35 = vadd.f32 %v278_v15, %v276_v27  ;;  %v1611_v36 = vadd.f32 %v278_v15, %v277_v28  ;;  %s2707_s24 = sld [smem:[#allocation49_spill]] }
 0x105   :  { %v288_v45 = vstv %s1456_s9  ;;  %v293_v21 = vstv %s2684_s7  ;;  %v298_v46 = vstv %s2685_s8  ;;  %v307_v22 = vstv %s2686_s26  ;;  %s2695_s9 = sld [smem:[#allocation26_spill]] }
 0x106   :  { %v1617_v47 = vadd.f32 %v288_v45, %v284_v29  ;;  %v1619_v23 = vadd.f32 %v288_v45, %v285_v30  ;;  %v1621_v25 = vadd.f32 %v288_v45, %v286_v31  ;;  %v1623_v48 = vadd.f32 %v288_v45, %v287_v32  ;;  %s2708_s25 = sld [smem:[#allocation50_spill]] }
 0x107   :  { %v294_v49 = vmul.f32 %v293_v21, %v1480_v0  ;;  %v295_v50 = vmul.f32 %v293_v21, %v1485_v1  ;;  %v296_v51 = vmul.f32 %v293_v21, %v1490_v2  ;;  %v297_v52 = vmul.f32 %v293_v21, %v1496_v4  ;;  %s2709_s1 = sld [smem:[#allocation51_spill]] }
 0x108   :  { %v316_v61 = vstv %s2687_s27  ;;  %v325_v62 = vstv %s2688_s28  ;;  %v334_v63 = vstv %s2689_s29  ;;  %v343_v3 = vstv %s2690_s10  ;;  %s2710_s6 = sld [smem:[#allocation52_spill]] }
 0x109   :  { %v299_v5 = vadd.f32 %v298_v46, %v294_v49  ;;  %v300_v6 = vadd.f32 %v298_v46, %v295_v50  ;;  %v301_v7 = vadd.f32 %v298_v46, %v296_v51  ;;  %v302_v8 = vadd.f32 %v298_v46, %v297_v52  ;;  %s2711_s7 = sld [smem:[#allocation53_spill]] }
 0x10a   :  { %v352_v13 = vstv %s2691_s11  ;;  %v361_v14 = vstv %s2692_s12  ;;  %v1636_v15 = vstv %s2693_s13  ;;  %v379_v16 = vstv %s2694_s3  ;;  %s2712_s8 = sld [smem:[#allocation54_spill]] }
 0x10b   :  { %v303_v24 = vmax.f32 %v299_v5, 0.0  ;;  %v304_v26 = vmax.f32 %v300_v6, 0.0  ;;  %v305_v27 = vmax.f32 %v301_v7, 0.0  ;;  %v306_v28 = vmax.f32 %v302_v8, 0.0  ;;  %s2713_s26 = sld [smem:[#allocation55_spill]] }
 0x10c   :  { %v1640_v29 = vmul.f32 %v379_v16, %v1480_v0  ;;  %v1643_v30 = vmul.f32 %v379_v16, %v1485_v1  ;;  %v1646_v31 = vmul.f32 %v379_v16, %v1490_v2  ;;  %v1649_v32 = vmul.f32 %v379_v16, %v1496_v4  ;;  %s2714_s27 = sld [smem:[#allocation21_spill]] }
 0x10d   :  { %v308_v45 = vmul.f32 %v307_v22, %v303_v24  ;;  %v309_v21 = vmul.f32 %v307_v22, %v304_v26  ;;  %v310_v46 = vmul.f32 %v307_v22, %v305_v27  ;;  %v311_v49 = vmul.f32 %v307_v22, %v306_v28  ;;  %s2717_s28 = sld [smem:[#allocation28_spill]] }
 0x10e   :  { %v317_v50 = vmul.f32 %v316_v61, %v303_v24  ;;  %v318_v51 = vmul.f32 %v316_v61, %v304_v26  ;;  %v319_v52 = vmul.f32 %v316_v61, %v305_v27  ;;  %v320_v5 = vmul.f32 %v316_v61, %v306_v28  ;;  %s2718_s29 = sld [smem:[#allocation56_spill]] }
 0x10f   :  { %v1652_v6 = vadd.f32 %v308_v45, %v1529_v37  ;;  %v1655_v7 = vadd.f32 %v309_v21, %v1531_v38  ;;  %v1658_v8 = vadd.f32 %v310_v46, %v1533_v39  ;;  %v1661_v16 = vadd.f32 %v311_v49, %v1537_v41  ;;  %s2719_s10 = sld [smem:[#allocation57_spill]] }
 0x110   :  { %v1664_v4 = vadd.f32 %v317_v50, %v1535_v40  ;;  %v1667_v22 = vadd.f32 %v318_v51, %v1539_v42  ;;  %v1670_v61 = vadd.f32 %v319_v52, %v1541_v43  ;;  %v1673_v37 = vadd.f32 %v320_v5, %v1543_v44  ;;  %s2720_s11 = sld [smem:[#allocation58_spill]] }
 0x111   :  { %v326_v38 = vmul.f32 %v325_v62, %v303_v24  ;;  %v327_v45 = vmul.f32 %v325_v62, %v304_v26  ;;  %v328_v21 = vmul.f32 %v325_v62, %v305_v27  ;;  %v329_v39 = vmul.f32 %v325_v62, %v306_v28  ;;  %s2721_s12 = sld [smem:[#allocation59_spill]] }
 0x112   :  { %v335_v46 = vmul.f32 %v334_v63, %v303_v24  ;;  %v336_v2 = vmul.f32 %v334_v63, %v304_v26  ;;  %v337_v41 = vmul.f32 %v334_v63, %v305_v27  ;;  %v338_v49 = vmul.f32 %v334_v63, %v306_v28  ;;  %s2722_s13 = sld [smem:[#allocation60_spill]] }
 0x113   :  { %v1676_v40 = vadd.f32 %v326_v38, %v1553_v53  ;;  %v1679_v42 = vadd.f32 %v327_v45, %v1555_v54  ;;  %v1682_v43 = vadd.f32 %v328_v21, %v1557_v55  ;;  %v1685_v44 = vadd.f32 %v329_v39, %v1559_v56  ;;  %s2723_s3 = sld [smem:[#allocation61_spill]] }
 0x114   :  { %v1688_v50 = vadd.f32 %v335_v46, %v1561_v57  ;;  %v1691_v62 = vadd.f32 %v336_v2, %v1563_v58  ;;  %v1694_v63 = vadd.f32 %v337_v41, %v1565_v59  ;;  %v1697_v53 = vadd.f32 %v338_v49, %v1567_v60 }
 0x115   :  { %v344_v54 = vmul.f32 %v343_v3, %v303_v24  ;;  %v345_v51 = vmul.f32 %v343_v3, %v304_v26  ;;  %v346_v52 = vmul.f32 %v343_v3, %v305_v27  ;;  %v347_v55 = vmul.f32 %v343_v3, %v306_v28 }
 0x116   :  { %v353_v5 = vmul.f32 %v352_v13, %v303_v24  ;;  %v354_v38 = vmul.f32 %v352_v13, %v304_v26  ;;  %v355_v56 = vmul.f32 %v352_v13, %v305_v27  ;;  %v356_v45 = vmul.f32 %v352_v13, %v306_v28 }
 0x117   :  { %v1700_v57 = vadd.f32 %v344_v54, %v1577_v9  ;;  %v1703_v2 = vadd.f32 %v345_v51, %v1579_v10  ;;  %v1706_v58 = vadd.f32 %v346_v52, %v1581_v11  ;;  %v1709_v59 = vadd.f32 %v347_v55, %v1583_v12 }
 0x118   :  { %v1712_v60 = vadd.f32 %v353_v5, %v1589_v17  ;;  %v1715_v3 = vadd.f32 %v354_v38, %v1591_v18  ;;  %v1718_v13 = vadd.f32 %v355_v56, %v1593_v19  ;;  %v1721_v9 = vadd.f32 %v356_v45, %v1595_v20 }
 0x119   :  { %v362_v10 = vmul.f32 %v361_v14, %v303_v24  ;;  %v363_v21 = vmul.f32 %v361_v14, %v304_v26  ;;  %v364_v11 = vmul.f32 %v361_v14, %v305_v27  ;;  %v365_v12 = vmul.f32 %v361_v14, %v306_v28 }
 0x11a   :  { %v371_v17 = vmul.f32 %v1636_v15, %v303_v24  ;;  %v372_v39 = vmul.f32 %v1636_v15, %v304_v26  ;;  %v373_v18 = vmul.f32 %v1636_v15, %v305_v27  ;;  %v374_v19 = vmul.f32 %v1636_v15, %v306_v28 }
 0x11b   :  { %v1728_v46 = vadd.f32 %v362_v10, %v1605_v33  ;;  %v1731_v20 = vadd.f32 %v363_v21, %v1607_v34  ;;  %v1734_v41 = vadd.f32 %v364_v11, %v1609_v35  ;;  %v1737_v14 = vadd.f32 %v365_v12, %v1611_v36 }
 0x11c   :  { %v1740_v24 = vadd.f32 %v371_v17, %v1617_v47  ;;  %v1743_v15 = vadd.f32 %v372_v39, %v1619_v23  ;;  %v1746_v33 = vadd.f32 %v373_v18, %v1621_v25  ;;  %v1749_v34 = vadd.f32 %v374_v19, %v1623_v48 }
 0x11d   :  { %v384_v26 = vstv %s2695_s9  ;;  %v393_v35 = vstv %s2696_s14  ;;  %v402_v27 = vstv %s2697_s15  ;;  %v411_v36 = vstv %s2698_s17  ;;  %s2724_s9 = sld [smem:[#allocation62_spill]] }
 0x11e   :  { %v385_v47 = vadd.f32 %v384_v26, %v1640_v29  ;;  %v386_v28 = vadd.f32 %v384_v26, %v1643_v30  ;;  %v387_v23 = vadd.f32 %v384_v26, %v1646_v31  ;;  %v388_v25 = vadd.f32 %v384_v26, %v1649_v32  ;;  %s2725_s14 = sld [smem:[#allocation63_spill]] }
 0x11f   :  { %v420_v49 = vstv %s2699_s18  ;;  %v429_v54 = vstv %s2700_s19  ;;  %v438_v48 = vstv %s2701_s20  ;;  %v447_v51 = vstv %s2702_s21  ;;  %s2726_s15 = sld [smem:[#allocation22_spill]] }
 0x120   :  { %v389_v52 = vmax.f32 %v385_v47, 0.0  ;;  %v390_v55 = vmax.f32 %v386_v28, 0.0  ;;  %v391_v5 = vmax.f32 %v387_v23, 0.0  ;;  %v392_v38 = vmax.f32 %v388_v25, 0.0  ;;  %s2727_s17 = sld [smem:[#allocation29_spill]] }
 0x121   :  { %v456_v56 = vstv %s2703_s2  ;;  %v1765_v45 = vstv %s2704_s4  ;;  %v1768_v10 = vstv %s2705_s22  ;;  %v1771_v29 = vstv %s2706_s23  ;;  %s2728_s18 = sld [smem:[#allocation64_spill]] }
 0x122   :  { %v394_v30 = vmul.f32 %v393_v35, %v389_v52  ;;  %v395_v21 = vmul.f32 %v393_v35, %v390_v55  ;;  %v396_v31 = vmul.f32 %v393_v35, %v391_v5  ;;  %v397_v11 = vmul.f32 %v393_v35, %v392_v38  ;;  %s2729_s19 = sld [smem:[#allocation65_spill]] }
 0x123   :  { %v403_v32 = vmul.f32 %v402_v27, %v389_v52  ;;  %v404_v12 = vmul.f32 %v402_v27, %v390_v55  ;;  %v405_v17 = vmul.f32 %v402_v27, %v391_v5  ;;  %v406_v39 = vmul.f32 %v402_v27, %v392_v38  ;;  %s2730_s20 = sld [smem:[#allocation66_spill]] }
 0x124   :  { %v1774_v18 = vadd.f32 %v394_v30, %v1652_v6  ;;  %v1777_v19 = vadd.f32 %v395_v21, %v1655_v7  ;;  %v1780_v26 = vadd.f32 %v396_v31, %v1658_v8  ;;  %v1783_v47 = vadd.f32 %v397_v11, %v1661_v16  ;;  %s2731_s21 = sld [smem:[#allocation67_spill]] }
 0x125   :  { %v1786_v28 = vadd.f32 %v403_v32, %v1664_v4  ;;  %v1789_v35 = vadd.f32 %v404_v12, %v1667_v22  ;;  %v1792_v27 = vadd.f32 %v405_v17, %v1670_v61  ;;  %v1795_v6 = vadd.f32 %v406_v39, %v1673_v37  ;;  %s2732_s2 = sld [smem:[#allocation68_spill]] }
 0x126   :  { %v412_v7 = vmul.f32 %v411_v36, %v389_v52  ;;  %v413_v23 = vmul.f32 %v411_v36, %v390_v55  ;;  %v414_v25 = vmul.f32 %v411_v36, %v391_v5  ;;  %v415_v8 = vmul.f32 %v411_v36, %v392_v38  ;;  %s2733_s4 = sld [smem:[#allocation69_spill]] }
 0x127   :  { %v421_v30 = vmul.f32 %v420_v49, %v389_v52  ;;  %v422_v21 = vmul.f32 %v420_v49, %v390_v55  ;;  %v423_v16 = vmul.f32 %v420_v49, %v391_v5  ;;  %v424_v31 = vmul.f32 %v420_v49, %v392_v38  ;;  %s2734_s22 = sld [smem:[#allocation70_spill]] }
 0x128   :  { %v1798_v4 = vadd.f32 %v412_v7, %v1676_v40  ;;  %v1801_v22 = vadd.f32 %v413_v23, %v1679_v42  ;;  %v1804_v61 = vadd.f32 %v414_v25, %v1682_v43  ;;  %v1807_v37 = vadd.f32 %v415_v8, %v1685_v44  ;;  %s2735_s23 = sld [smem:[#allocation71_spill]] }
 0x129   :  { %v1810_v11 = vadd.f32 %v421_v30, %v1688_v50  ;;  %v1813_v36 = vadd.f32 %v422_v21, %v1691_v62  ;;  %v1816_v49 = vadd.f32 %v423_v16, %v1694_v63  ;;  %v1819_v40 = vadd.f32 %v424_v31, %v1697_v53 }
 0x12a   :  { %v430_v42 = vmul.f32 %v429_v54, %v389_v52  ;;  %v431_v32 = vmul.f32 %v429_v54, %v390_v55  ;;  %v432_v12 = vmul.f32 %v429_v54, %v391_v5  ;;  %v433_v43 = vmul.f32 %v429_v54, %v392_v38 }
 0x12b   :  { %v439_v17 = vmul.f32 %v438_v48, %v389_v52  ;;  %v440_v39 = vmul.f32 %v438_v48, %v390_v55  ;;  %v441_v44 = vmul.f32 %v438_v48, %v391_v5  ;;  %v442_v7 = vmul.f32 %v438_v48, %v392_v38 }
 0x12c   :  { %v1822_v50 = vadd.f32 %v430_v42, %v1700_v57  ;;  %v1825_v62 = vadd.f32 %v431_v32, %v1703_v2  ;;  %v1828_v63 = vadd.f32 %v432_v12, %v1706_v58  ;;  %v1831_v53 = vadd.f32 %v433_v43, %v1709_v59 }
 0x12d   :  { %v1834_v23 = vadd.f32 %v439_v17, %v1712_v60  ;;  %v1837_v54 = vadd.f32 %v440_v39, %v1715_v3  ;;  %v1840_v48 = vadd.f32 %v441_v44, %v1718_v13  ;;  %v1843_v57 = vadd.f32 %v442_v7, %v1721_v9 }
 0x12e   :  { %v448_v2 = vmul.f32 %v447_v51, %v389_v52  ;;  %v449_v25 = vmul.f32 %v447_v51, %v390_v55  ;;  %v450_v8 = vmul.f32 %v447_v51, %v391_v5  ;;  %v451_v58 = vmul.f32 %v447_v51, %v392_v38 }
 0x12f   :  { %v457_v30 = vmul.f32 %v456_v56, %v389_v52  ;;  %v458_v59 = vmul.f32 %v456_v56, %v390_v55  ;;  %v459_v21 = vmul.f32 %v456_v56, %v391_v5  ;;  %v460_v60 = vmul.f32 %v456_v56, %v392_v38 }
 0x130   :  { %v1846_v3 = vadd.f32 %v448_v2, %v1728_v46  ;;  %v1849_v13 = vadd.f32 %v449_v25, %v1731_v20  ;;  %v1852_v9 = vadd.f32 %v450_v8, %v1734_v41  ;;  %v1855_v16 = vadd.f32 %v451_v58, %v1737_v14 }
 0x131   :  { %v1858_v51 = vadd.f32 %v457_v30, %v1740_v24  ;;  %v1861_v52 = vadd.f32 %v458_v59, %v1743_v15  ;;  %v1864_v46 = vadd.f32 %v459_v21, %v1746_v33  ;;  %v1867_v20 = vadd.f32 %v460_v60, %v1749_v34  ;;  %v2715_v24 = vld [vmem:[#allocation93_spill] sm:$0xff]  ;;  %v2716_v15 = vld [vmem:[#allocation94_spill] sm:$0xff] }
 0x132   :  { %v466_v41 = vmul.f32 %v1765_v45, %v1480_v0  ;;  %v467_v14 = vmul.f32 %v1765_v45, %v1485_v1  ;;  %v468_v55 = vmul.f32 %v1765_v45, %v2715_v24  ;;  %v469_v5 = vmul.f32 %v1765_v45, %v2716_v15 }
 0x133   :  { %v488_v38 = vstv %s2707_s24  ;;  %v497_v33 = vstv %s2708_s25  ;;  %v506_v56 = vstv %s2709_s1  ;;  %v515_v31 = vstv %s2710_s6  ;;  %s2736_s24 = sld [smem:[#allocation23_spill]] }
 0x134   :  { %v471_v34 = vadd.f32 %v1768_v10, %v466_v41  ;;  %v472_v42 = vadd.f32 %v1768_v10, %v467_v14  ;;  %v473_v32 = vadd.f32 %v1768_v10, %v468_v55  ;;  %v474_v12 = vadd.f32 %v1768_v10, %v469_v5  ;;  %s2739_s25 = sld [smem:[#allocation30_spill]] }
 0x135   :  { %v524_v43 = vstv %s2711_s7  ;;  %v533_v17 = vstv %s2712_s8  ;;  %v1888_v39 = vstv %s2713_s26  ;;  %v551_v44 = vstv %s2714_s27  ;;  %s2740_s1 = sld [smem:[#allocation72_spill]] }
 0x136   :  { %v475_v7 = vmax.f32 %v471_v34, 0.0  ;;  %v476_v2 = vmax.f32 %v472_v42, 0.0  ;;  %v477_v45 = vmax.f32 %v473_v32, 0.0  ;;  %v478_v25 = vmax.f32 %v474_v12, 0.0  ;;  %s2741_s6 = sld [smem:[#allocation73_spill]] }
 0x137   :  { %v1892_v8 = vmul.f32 %v551_v44, %v1480_v0  ;;  %v1895_v58 = vmul.f32 %v551_v44, %v1485_v1  ;;  %v1898_v30 = vmul.f32 %v551_v44, %v2715_v24  ;;  %v1901_v10 = vmul.f32 %v551_v44, %v2716_v15  ;;  %s2742_s7 = sld [smem:[#allocation74_spill]] }
 0x138   :  { %v480_v59 = vmul.f32 %v1771_v29, %v475_v7  ;;  %v481_v21 = vmul.f32 %v1771_v29, %v476_v2  ;;  %v482_v60 = vmul.f32 %v1771_v29, %v477_v45  ;;  %v483_v41 = vmul.f32 %v1771_v29, %v478_v25  ;;  %s2743_s8 = sld [smem:[#allocation75_spill]] }
 0x139   :  { %v489_v14 = vmul.f32 %v488_v38, %v475_v7  ;;  %v490_v55 = vmul.f32 %v488_v38, %v476_v2  ;;  %v491_v5 = vmul.f32 %v488_v38, %v477_v45  ;;  %v492_v34 = vmul.f32 %v488_v38, %v478_v25  ;;  %s2744_s26 = sld [smem:[#allocation76_spill]] }
 0x13a   :  { %v1908_v42 = vadd.f32 %v480_v59, %v1774_v18  ;;  %v1911_v32 = vadd.f32 %v481_v21, %v1777_v19  ;;  %v1914_v12 = vadd.f32 %v482_v60, %v1780_v26  ;;  %v1917_v44 = vadd.f32 %v483_v41, %v1783_v47  ;;  %s2745_s27 = sld [smem:[#allocation77_spill]] }
 0x13b   :  { %v1920_v15 = vadd.f32 %v489_v14, %v1786_v28  ;;  %v1923_v29 = vadd.f32 %v490_v55, %v1789_v35  ;;  %v1926_v38 = vadd.f32 %v491_v5, %v1792_v27  ;;  %v1929_v18 = vadd.f32 %v492_v34, %v1795_v6 }
 0x13c   :  { %v498_v19 = vmul.f32 %v497_v33, %v475_v7  ;;  %v499_v59 = vmul.f32 %v497_v33, %v476_v2  ;;  %v500_v21 = vmul.f32 %v497_v33, %v477_v45  ;;  %v501_v26 = vmul.f32 %v497_v33, %v478_v25 }
 0x13d   :  { %v507_v60 = vmul.f32 %v506_v56, %v475_v7  ;;  %v508_v24 = vmul.f32 %v506_v56, %v476_v2  ;;  %v509_v47 = vmul.f32 %v506_v56, %v477_v45  ;;  %v510_v41 = vmul.f32 %v506_v56, %v478_v25 }
 0x13e   :  { %v1932_v28 = vadd.f32 %v498_v19, %v1798_v4  ;;  %v1935_v35 = vadd.f32 %v499_v59, %v1801_v22  ;;  %v1938_v27 = vadd.f32 %v500_v21, %v1804_v61  ;;  %v1941_v6 = vadd.f32 %v501_v26, %v1807_v37 }
 0x13f   :  { %v1944_v14 = vadd.f32 %v507_v60, %v1810_v11  ;;  %v1947_v33 = vadd.f32 %v508_v24, %v1813_v36  ;;  %v1950_v56 = vadd.f32 %v509_v47, %v1816_v49  ;;  %v1953_v4 = vadd.f32 %v510_v41, %v1819_v40 }
 0x140   :  { %v516_v22 = vmul.f32 %v515_v31, %v475_v7  ;;  %v517_v55 = vmul.f32 %v515_v31, %v476_v2  ;;  %v518_v5 = vmul.f32 %v515_v31, %v477_v45  ;;  %v519_v61 = vmul.f32 %v515_v31, %v478_v25 }
 0x141   :  { %v525_v34 = vmul.f32 %v524_v43, %v475_v7  ;;  %v526_v19 = vmul.f32 %v524_v43, %v476_v2  ;;  %v527_v37 = vmul.f32 %v524_v43, %v477_v45  ;;  %v528_v59 = vmul.f32 %v524_v43, %v478_v25 }
 0x142   :  { %v1956_v11 = vadd.f32 %v516_v22, %v1822_v50  ;;  %v1959_v36 = vadd.f32 %v517_v55, %v1825_v62  ;;  %v1962_v49 = vadd.f32 %v518_v5, %v1828_v63  ;;  %v1965_v40 = vadd.f32 %v519_v61, %v1831_v53 }
 0x143   :  { %v1968_v24 = vadd.f32 %v525_v34, %v1834_v23  ;;  %v1971_v31 = vadd.f32 %v526_v19, %v1837_v54  ;;  %v1974_v43 = vadd.f32 %v527_v37, %v1840_v48  ;;  %v1977_v50 = vadd.f32 %v528_v59, %v1843_v57 }
 0x144   :  { %v534_v62 = vmul.f32 %v533_v17, %v475_v7  ;;  %v535_v21 = vmul.f32 %v533_v17, %v476_v2  ;;  %v536_v63 = vmul.f32 %v533_v17, %v477_v45  ;;  %v537_v53 = vmul.f32 %v533_v17, %v478_v25 }
 0x145   :  { %v543_v23 = vmul.f32 %v1888_v39, %v475_v7  ;;  %v544_v26 = vmul.f32 %v1888_v39, %v476_v2  ;;  %v545_v54 = vmul.f32 %v1888_v39, %v477_v45  ;;  %v546_v48 = vmul.f32 %v1888_v39, %v478_v25 }
 0x146   :  { %v1984_v60 = vadd.f32 %v534_v62, %v1846_v3  ;;  %v1987_v57 = vadd.f32 %v535_v21, %v1849_v13  ;;  %v1990_v47 = vadd.f32 %v536_v63, %v1852_v9  ;;  %v1993_v17 = vadd.f32 %v537_v53, %v1855_v16 }
 0x147   :  { %v1996_v7 = vadd.f32 %v543_v23, %v1858_v51  ;;  %v1999_v39 = vadd.f32 %v544_v26, %v1861_v52  ;;  %v2002_v3 = vadd.f32 %v545_v54, %v1864_v46  ;;  %v2005_v13 = vadd.f32 %v546_v48, %v1867_v20 }
 0x148   :  { %v556_v2 = vstv %s2717_s28  ;;  %v565_v9 = vstv %s2718_s29  ;;  %v574_v45 = vstv %s2719_s10  ;;  %v583_v16 = vstv %s2720_s11  ;;  %s2746_s28 = sld [smem:[#allocation78_spill]] }
 0x149   :  { %v557_v51 = vadd.f32 %v556_v2, %v1892_v8  ;;  %v558_v25 = vadd.f32 %v556_v2, %v1895_v58  ;;  %v559_v52 = vadd.f32 %v556_v2, %v1898_v30  ;;  %v560_v46 = vadd.f32 %v556_v2, %v1901_v10  ;;  %s2747_s29 = sld [smem:[#allocation79_spill]] }
 0x14a   :  { %v592_v41 = vstv %s2721_s12  ;;  %v601_v22 = vstv %s2722_s13  ;;  %v610_v20 = vstv %s2723_s3  ;;  %v619_v55 = vstv %s2724_s9  ;;  %s2748_s10 = sld [smem:[#allocation24_spill]] }
 0x14b   :  { %v561_v5 = vmax.f32 %v557_v51, 0.0  ;;  %v562_v61 = vmax.f32 %v558_v25, 0.0  ;;  %v563_v34 = vmax.f32 %v559_v52, 0.0  ;;  %v564_v19 = vmax.f32 %v560_v46, 0.0  ;;  %s2749_s11 = sld [smem:[#allocation31_spill]] }
 0x14c   :  { %v628_v37 = vstv %s2725_s14  ;;  %v2021_v59 = vstv %s2726_s15  ;;  %v2024_v62 = vstv %s2727_s17  ;;  %v2027_v8 = vstv %s2728_s18  ;;  %s2750_s12 = sld [smem:[#allocation80_spill]] }
 0x14d   :  { %v566_v58 = vmul.f32 %v565_v9, %v561_v5  ;;  %v567_v21 = vmul.f32 %v565_v9, %v562_v61  ;;  %v568_v30 = vmul.f32 %v565_v9, %v563_v34  ;;  %v569_v63 = vmul.f32 %v565_v9, %v564_v19  ;;  %s2751_s13 = sld [smem:[#allocation81_spill]] }
 0x14e   :  { %v575_v10 = vmul.f32 %v574_v45, %v561_v5  ;;  %v576_v53 = vmul.f32 %v574_v45, %v562_v61  ;;  %v577_v23 = vmul.f32 %v574_v45, %v563_v34  ;;  %v578_v26 = vmul.f32 %v574_v45, %v564_v19  ;;  %s2752_s3 = sld [smem:[#allocation82_spill]] }
 0x14f   :  { %v2030_v54 = vadd.f32 %v566_v58, %v1908_v42  ;;  %v2033_v48 = vadd.f32 %v567_v21, %v1911_v32  ;;  %v2036_v2 = vadd.f32 %v568_v30, %v1914_v12  ;;  %v2039_v51 = vadd.f32 %v569_v63, %v1917_v44  ;;  %s2753_s9 = sld [smem:[#allocation83_spill]] }
 0x150   :  { %v2042_v25 = vadd.f32 %v575_v10, %v1920_v15  ;;  %v2045_v9 = vadd.f32 %v576_v53, %v1923_v29  ;;  %v2048_v45 = vadd.f32 %v577_v23, %v1926_v38  ;;  %v2051_v42 = vadd.f32 %v578_v26, %v1929_v18  ;;  %s2754_s14 = sld [smem:[#allocation84_spill]] }
 0x151   :  { %v584_v32 = vmul.f32 %v583_v16, %v561_v5  ;;  %v585_v52 = vmul.f32 %v583_v16, %v562_v61  ;;  %v586_v46 = vmul.f32 %v583_v16, %v563_v34  ;;  %v587_v12 = vmul.f32 %v583_v16, %v564_v19  ;;  %s2755_s18 = sld [smem:[#allocation85_spill]] }
 0x152   :  { %v593_v58 = vmul.f32 %v592_v41, %v561_v5  ;;  %v594_v21 = vmul.f32 %v592_v41, %v562_v61  ;;  %v595_v44 = vmul.f32 %v592_v41, %v563_v34  ;;  %v596_v30 = vmul.f32 %v592_v41, %v564_v19 }
 0x153   :  { %v2054_v15 = vadd.f32 %v584_v32, %v1932_v28  ;;  %v2057_v29 = vadd.f32 %v585_v52, %v1935_v35  ;;  %v2060_v38 = vadd.f32 %v586_v46, %v1938_v27  ;;  %v2063_v18 = vadd.f32 %v587_v12, %v1941_v6 }
 0x154   :  { %v2066_v63 = vadd.f32 %v593_v58, %v1944_v14  ;;  %v2069_v16 = vadd.f32 %v594_v21, %v1947_v33  ;;  %v2072_v41 = vadd.f32 %v595_v44, %v1950_v56  ;;  %v2075_v28 = vadd.f32 %v596_v30, %v1953_v4 }
 0x155   :  { %v602_v35 = vmul.f32 %v601_v22, %v561_v5  ;;  %v603_v10 = vmul.f32 %v601_v22, %v562_v61  ;;  %v604_v53 = vmul.f32 %v601_v22, %v563_v34  ;;  %v605_v27 = vmul.f32 %v601_v22, %v564_v19 }
 0x156   :  { %v611_v23 = vmul.f32 %v610_v20, %v561_v5  ;;  %v612_v26 = vmul.f32 %v610_v20, %v562_v61  ;;  %v613_v6 = vmul.f32 %v610_v20, %v563_v34  ;;  %v614_v32 = vmul.f32 %v610_v20, %v564_v19 }
 0x157   :  { %v2078_v14 = vadd.f32 %v602_v35, %v1956_v11  ;;  %v2081_v33 = vadd.f32 %v603_v10, %v1959_v36  ;;  %v2084_v56 = vadd.f32 %v604_v53, %v1962_v49  ;;  %v2087_v4 = vadd.f32 %v605_v27, %v1965_v40 }
 0x158   :  { %v2090_v52 = vadd.f32 %v611_v23, %v1968_v24  ;;  %v2093_v22 = vadd.f32 %v612_v26, %v1971_v31  ;;  %v2096_v20 = vadd.f32 %v613_v6, %v1974_v43  ;;  %v2099_v11 = vadd.f32 %v614_v32, %v1977_v50 }
 0x159   :  { %v620_v36 = vmul.f32 %v619_v55, %v561_v5  ;;  %v621_v46 = vmul.f32 %v619_v55, %v562_v61  ;;  %v622_v12 = vmul.f32 %v619_v55, %v563_v34  ;;  %v623_v49 = vmul.f32 %v619_v55, %v564_v19 }
 0x15a   :  { %v629_v58 = vmul.f32 %v628_v37, %v561_v5  ;;  %v630_v40 = vmul.f32 %v628_v37, %v562_v61  ;;  %v631_v21 = vmul.f32 %v628_v37, %v563_v34  ;;  %v632_v24 = vmul.f32 %v628_v37, %v564_v19 }
 0x15b   :  { %v2102_v31 = vadd.f32 %v620_v36, %v1984_v60  ;;  %v2105_v43 = vadd.f32 %v621_v46, %v1987_v57  ;;  %v2108_v50 = vadd.f32 %v622_v12, %v1990_v47  ;;  %v2111_v44 = vadd.f32 %v623_v49, %v1993_v17 }
 0x15c   :  { %v2114_v55 = vadd.f32 %v629_v58, %v1996_v7  ;;  %v2117_v5 = vadd.f32 %v630_v40, %v1999_v39  ;;  %v2120_v60 = vadd.f32 %v631_v21, %v2002_v3  ;;  %v2123_v57 = vadd.f32 %v632_v24, %v2005_v13  ;;  %v2737_v7 = vld [vmem:[#allocation93_spill] sm:$0xff]  ;;  %v2738_v39 = vld [vmem:[#allocation94_spill] sm:$0xff] }
 0x15d   :  { %v638_v47 = vmul.f32 %v2021_v59, %v1480_v0  ;;  %v639_v17 = vmul.f32 %v2021_v59, %v1485_v1  ;;  %v640_v61 = vmul.f32 %v2021_v59, %v2737_v7  ;;  %v641_v34 = vmul.f32 %v2021_v59, %v2738_v39 }
 0x15e   :  { %v660_v19 = vstv %s2729_s19  ;;  %v669_v3 = vstv %s2730_s20  ;;  %v678_v37 = vstv %s2731_s21  ;;  %v687_v30 = vstv %s2732_s2  ;;  %s2756_s21 = sld [smem:[#allocation86_spill]] }
 0x15f   :  { %v643_v13 = vadd.f32 %v2024_v62, %v638_v47  ;;  %v644_v35 = vadd.f32 %v2024_v62, %v639_v17  ;;  %v645_v10 = vadd.f32 %v2024_v62, %v640_v61  ;;  %v646_v53 = vadd.f32 %v2024_v62, %v641_v34  ;;  %s2757_s2 = sld [smem:[#allocation87_spill]] }
 0x160   :  { %v696_v27 = vstv %s2733_s4  ;;  %v705_v23 = vstv %s2734_s22  ;;  %v2144_v26 = vstv %s2735_s23  ;;  %v723_v6 = vstv %s2736_s24  ;;  %s2758_s23 = sld [smem:[#allocation88_spill]] }
 0x161   :  { %v647_v32 = vmax.f32 %v643_v13, 0.0  ;;  %v648_v36 = vmax.f32 %v644_v35, 0.0  ;;  %v649_v59 = vmax.f32 %v645_v10, 0.0  ;;  %v650_v46 = vmax.f32 %v646_v53, 0.0 }
 0x162   :  { %v2148_v12 = vmul.f32 %v723_v6, %v1480_v0  ;;  %v2151_v49 = vmul.f32 %v723_v6, %v1485_v1  ;;  %v2154_v58 = vmul.f32 %v723_v6, %v2737_v7  ;;  %v2157_v62 = vmul.f32 %v723_v6, %v2738_v39 }
 0x163   :  { %v652_v40 = vmul.f32 %v2027_v8, %v647_v32  ;;  %v653_v21 = vmul.f32 %v2027_v8, %v648_v36  ;;  %v654_v24 = vmul.f32 %v2027_v8, %v649_v59  ;;  %v655_v47 = vmul.f32 %v2027_v8, %v650_v46 }
 0x164   :  { %v661_v17 = vmul.f32 %v660_v19, %v647_v32  ;;  %v662_v0 = vmul.f32 %v660_v19, %v648_v36  ;;  %v663_v61 = vmul.f32 %v660_v19, %v649_v59  ;;  %v664_v34 = vmul.f32 %v660_v19, %v650_v46 }
 0x165   :  { %v2164_v1 = vadd.f32 %v652_v40, %v2030_v54  ;;  %v2167_v7 = vadd.f32 %v653_v21, %v2033_v48  ;;  %v2170_v39 = vadd.f32 %v654_v24, %v2036_v2  ;;  %v2173_v13 = vadd.f32 %v655_v47, %v2039_v51 }
 0x166   :  { %v2176_v35 = vadd.f32 %v661_v17, %v2042_v25  ;;  %v2179_v8 = vadd.f32 %v662_v0, %v2045_v9  ;;  %v2182_v19 = vadd.f32 %v663_v61, %v2048_v45  ;;  %v2185_v54 = vadd.f32 %v664_v34, %v2051_v42 }
 0x167   :  { %v670_v48 = vmul.f32 %v669_v3, %v647_v32  ;;  %v671_v10 = vmul.f32 %v669_v3, %v648_v36  ;;  %v672_v53 = vmul.f32 %v669_v3, %v649_v59  ;;  %v673_v2 = vmul.f32 %v669_v3, %v650_v46 }
 0x168   :  { %v679_v6 = vmul.f32 %v678_v37, %v647_v32  ;;  %v680_v40 = vmul.f32 %v678_v37, %v648_v36  ;;  %v681_v51 = vmul.f32 %v678_v37, %v649_v59  ;;  %v682_v21 = vmul.f32 %v678_v37, %v650_v46 }
 0x169   :  { %v2188_v25 = vadd.f32 %v670_v48, %v2054_v15  ;;  %v2191_v9 = vadd.f32 %v671_v10, %v2057_v29  ;;  %v2194_v45 = vadd.f32 %v672_v53, %v2060_v38  ;;  %v2197_v42 = vadd.f32 %v673_v2, %v2063_v18 }
 0x16a   :  { %v2200_v24 = vadd.f32 %v679_v6, %v2066_v63  ;;  %v2203_v3 = vadd.f32 %v680_v40, %v2069_v16  ;;  %v2206_v37 = vadd.f32 %v681_v51, %v2072_v41  ;;  %v2209_v15 = vadd.f32 %v682_v21, %v2075_v28 }
 0x16b   :  { %v688_v29 = vmul.f32 %v687_v30, %v647_v32  ;;  %v689_v47 = vmul.f32 %v687_v30, %v648_v36  ;;  %v690_v17 = vmul.f32 %v687_v30, %v649_v59  ;;  %v691_v38 = vmul.f32 %v687_v30, %v650_v46 }
 0x16c   :  { %v697_v0 = vmul.f32 %v696_v27, %v647_v32  ;;  %v698_v61 = vmul.f32 %v696_v27, %v648_v36  ;;  %v699_v18 = vmul.f32 %v696_v27, %v649_v59  ;;  %v700_v34 = vmul.f32 %v696_v27, %v650_v46 }
 0x16d   :  { %v2212_v63 = vadd.f32 %v688_v29, %v2078_v14  ;;  %v2215_v16 = vadd.f32 %v689_v47, %v2081_v33  ;;  %v2218_v41 = vadd.f32 %v690_v17, %v2084_v56  ;;  %v2221_v28 = vadd.f32 %v691_v38, %v2087_v4 }
 0x16e   :  { %v2224_v48 = vadd.f32 %v697_v0, %v2090_v52  ;;  %v2227_v30 = vadd.f32 %v698_v61, %v2093_v22  ;;  %v2230_v27 = vadd.f32 %v699_v18, %v2096_v20  ;;  %v2233_v14 = vadd.f32 %v700_v34, %v2099_v11 }
 0x16f   :  { %v706_v33 = vmul.f32 %v705_v23, %v647_v32  ;;  %v707_v10 = vmul.f32 %v705_v23, %v648_v36  ;;  %v708_v56 = vmul.f32 %v705_v23, %v649_v59  ;;  %v709_v4 = vmul.f32 %v705_v23, %v650_v46 }
 0x170   :  { %v715_v52 = vmul.f32 %v2144_v26, %v647_v32  ;;  %v716_v53 = vmul.f32 %v2144_v26, %v648_v36  ;;  %v717_v22 = vmul.f32 %v2144_v26, %v649_v59  ;;  %v718_v20 = vmul.f32 %v2144_v26, %v650_v46 }
 0x171   :  { %v2240_v2 = vadd.f32 %v706_v33, %v2102_v31  ;;  %v2243_v11 = vadd.f32 %v707_v10, %v2105_v43  ;;  %v2246_v6 = vadd.f32 %v708_v56, %v2108_v50  ;;  %v2249_v23 = vadd.f32 %v709_v4, %v2111_v44 }
 0x172   :  { %v2252_v32 = vadd.f32 %v715_v52, %v2114_v55  ;;  %v2255_v26 = vadd.f32 %v716_v53, %v2117_v5  ;;  %v2258_v31 = vadd.f32 %v717_v22, %v2120_v60  ;;  %v2261_v43 = vadd.f32 %v718_v20, %v2123_v57 }
 0x173   :  { %v728_v36 = vstv %s2739_s25  ;;  %v737_v50 = vstv %s2740_s1  ;;  %v746_v59 = vstv %s2741_s6  ;;  %v755_v44 = vstv %s2742_s7  ;;  %s2759_s6 = sld [smem:[#allocation95_spill]] }
 0x174   :  { %v729_v55 = vadd.f32 %v728_v36, %v2148_v12  ;;  %v730_v46 = vadd.f32 %v728_v36, %v2151_v49  ;;  %v731_v5 = vadd.f32 %v728_v36, %v2154_v58  ;;  %v732_v60 = vadd.f32 %v728_v36, %v2157_v62  ;;  %s2763_s7 = sld [smem:[#allocation92_spill]] }
 0x175   :  { %v764_v40 = vstv %s2743_s8  ;;  %v773_v51 = vstv %s2744_s26  ;;  %v782_v57 = vstv %s2745_s27  ;;  %v791_v21 = vstv %s2746_s28 }
 0x176   :  { %v733_v29 = vmax.f32 %v729_v55, 0.0  ;;  %v734_v47 = vmax.f32 %v730_v46, 0.0  ;;  %v735_v17 = vmax.f32 %v731_v5, 0.0  ;;  %v736_v38 = vmax.f32 %v732_v60, 0.0 }
 0x177   :  { %v800_v0 = vstv %s2747_s29  ;;  %v2277_v61 = vstv %s2748_s10  ;;  %v2280_v18 = vstv %s2749_s11  ;;  %v2283_v12 = vstv %s2750_s12 }
 0x178   :  { %v738_v49 = vmul.f32 %v737_v50, %v733_v29  ;;  %v739_v34 = vmul.f32 %v737_v50, %v734_v47  ;;  %v740_v58 = vmul.f32 %v737_v50, %v735_v17  ;;  %v741_v33 = vmul.f32 %v737_v50, %v736_v38 }
 0x179   :  { %v747_v62 = vmul.f32 %v746_v59, %v733_v29  ;;  %v748_v10 = vmul.f32 %v746_v59, %v734_v47  ;;  %v749_v56 = vmul.f32 %v746_v59, %v735_v17  ;;  %v750_v4 = vmul.f32 %v746_v59, %v736_v38 }
 0x17a   :  { %v2286_v52 = vadd.f32 %v738_v49, %v2164_v1  ;;  %v2289_v53 = vadd.f32 %v739_v34, %v2167_v7  ;;  %v2292_v22 = vadd.f32 %v740_v58, %v2170_v39  ;;  %v2295_v20 = vadd.f32 %v741_v33, %v2173_v13 }
 0x17b   :  { %v2298_v36 = vadd.f32 %v747_v62, %v2176_v35  ;;  %v2301_v50 = vadd.f32 %v748_v10, %v2179_v8  ;;  %v2304_v59 = vadd.f32 %v749_v56, %v2182_v19  ;;  %v2307_v1 = vadd.f32 %v750_v4, %v2185_v54 }
 0x17c   :  { %v756_v7 = vmul.f32 %v755_v44, %v733_v29  ;;  %v757_v55 = vmul.f32 %v755_v44, %v734_v47  ;;  %v758_v46 = vmul.f32 %v755_v44, %v735_v17  ;;  %v759_v39 = vmul.f32 %v755_v44, %v736_v38 }
 0x17d   :  { %v765_v5 = vmul.f32 %v764_v40, %v733_v29  ;;  %v766_v60 = vmul.f32 %v764_v40, %v734_v47  ;;  %v767_v13 = vmul.f32 %v764_v40, %v735_v17  ;;  %v768_v49 = vmul.f32 %v764_v40, %v736_v38 }
 0x17e   :  { %v2310_v35 = vadd.f32 %v756_v7, %v2188_v25  ;;  %v2313_v8 = vadd.f32 %v757_v55, %v2191_v9  ;;  %v2316_v19 = vadd.f32 %v758_v46, %v2194_v45  ;;  %v2319_v54 = vadd.f32 %v759_v39, %v2197_v42 }
 0x17f   :  { %v2322_v34 = vadd.f32 %v765_v5, %v2200_v24  ;;  %v2325_v44 = vadd.f32 %v766_v60, %v2203_v3  ;;  %v2328_v40 = vadd.f32 %v767_v13, %v2206_v37  ;;  %v2331_v25 = vadd.f32 %v768_v49, %v2209_v15 }
 0x180   :  { %v774_v9 = vmul.f32 %v773_v51, %v733_v29  ;;  %v775_v58 = vmul.f32 %v773_v51, %v734_v47  ;;  %v776_v33 = vmul.f32 %v773_v51, %v735_v17  ;;  %v777_v45 = vmul.f32 %v773_v51, %v736_v38 }
 0x181   :  { %v783_v62 = vmul.f32 %v782_v57, %v733_v29  ;;  %v784_v10 = vmul.f32 %v782_v57, %v734_v47  ;;  %v785_v42 = vmul.f32 %v782_v57, %v735_v17  ;;  %v786_v56 = vmul.f32 %v782_v57, %v736_v38 }
 0x182   :  { %v2334_v24 = vadd.f32 %v774_v9, %v2212_v63  ;;  %v2337_v3 = vadd.f32 %v775_v58, %v2215_v16  ;;  %v2340_v37 = vadd.f32 %v776_v33, %v2218_v41  ;;  %v2343_v15 = vadd.f32 %v777_v45, %v2221_v28 }
 0x183   :  { %v2346_v4 = vadd.f32 %v783_v62, %v2224_v48  ;;  %v2349_v51 = vadd.f32 %v784_v10, %v2227_v30  ;;  %v2352_v57 = vadd.f32 %v785_v42, %v2230_v27  ;;  %v2355_v63 = vadd.f32 %v786_v56, %v2233_v14 }
 0x184   :  { %v792_v16 = vmul.f32 %v791_v21, %v733_v29  ;;  %v793_v7 = vmul.f32 %v791_v21, %v734_v47  ;;  %v794_v55 = vmul.f32 %v791_v21, %v735_v17  ;;  %v795_v41 = vmul.f32 %v791_v21, %v736_v38 }
 0x185   :  { %v801_v46 = vmul.f32 %v800_v0, %v733_v29  ;;  %v802_v39 = vmul.f32 %v800_v0, %v734_v47  ;;  %v803_v28 = vmul.f32 %v800_v0, %v735_v17  ;;  %v804_v5 = vmul.f32 %v800_v0, %v736_v38  ;;  %v1127_v47 = vld [vmem:[%s2590_s0 + $0x18] sm:$0xff] }
 0x186   :  { %v2358_v48 = vadd.f32 %v792_v16, %v2240_v2  ;;  %v2361_v30 = vadd.f32 %v793_v7, %v2243_v11  ;;  %v2364_v27 = vadd.f32 %v794_v55, %v2246_v6  ;;  %v2367_v14 = vadd.f32 %v795_v41, %v2249_v23  ;;  %v1124_v6 = vld [vmem:[%s2590_s0] sm:$0xff] }
 0x187   :  { %v2370_v21 = vadd.f32 %v801_v46, %v2252_v32  ;;  %v2373_v29 = vadd.f32 %v802_v39, %v2255_v26  ;;  %v2376_v2 = vadd.f32 %v803_v28, %v2258_v31  ;;  %v2379_v11 = vadd.f32 %v804_v5, %v2261_v43  ;;  %v1125_v32 = vld [vmem:[%s2590_s0 + $0x8] sm:$0xff]  ;;  %v1126_v31 = vld [vmem:[%s2590_s0 + $0x10] sm:$0xff] }
 0x188   :  { %v810_v23 = vmul.f32 %v1124_v6, %v2277_v61  ;;  %v811_v26 = vmul.f32 %v1125_v32, %v2277_v61  ;;  %v812_v43 = vmul.f32 %v1126_v31, %v2277_v61  ;;  %v813_v17 = vmul.f32 %v1127_v47, %v2277_v61 }
 0x189   :  { %v832_v38 = vstv %s2751_s13  ;;  %v841_v0 = vstv %s2752_s3  ;;  %v850_v60 = vstv %s2753_s9  ;;  %v859_v13 = vstv %s2754_s14 }
 0x18a   :  { %v815_v49 = vadd.f32 %v2280_v18, %v810_v23  ;;  %v816_v9 = vadd.f32 %v2280_v18, %v811_v26  ;;  %v817_v58 = vadd.f32 %v2280_v18, %v812_v43  ;;  %v818_v33 = vadd.f32 %v2280_v18, %v813_v17 }
 0x18b   :  { %v868_v45 = vstv %s2755_s18  ;;  %v877_v62 = vstv %s2756_s21  ;;  %v2408_v10 = vstv %s2757_s2  ;;  %v2411_v61 = vstv %s2758_s23 }
 0x18c   :  { %v819_v42 = vmax.f32 %v815_v49, 0.0  ;;  %v820_v56 = vmax.f32 %v816_v9, 0.0  ;;  %v821_v16 = vmax.f32 %v817_v58, 0.0  ;;  %v822_v7 = vmax.f32 %v818_v33, 0.0 }
 0x18d   :  { %v2416_v55 = vstv %s2759_s6  ;;  %v2419_v41 = vstv %s1460_s30  ;;  %v2422_v46 = vstv %s1462_s5  ;;  %v2425_v18 = vstv %s1464_s16  ;;  %s2760_s30 = sld [smem:[#allocation89_spill]] }
 0x18e   :  { %v824_v39 = vmul.f32 %v2283_v12, %v819_v42  ;;  %v825_v28 = vmul.f32 %v2283_v12, %v820_v56  ;;  %v826_v5 = vmul.f32 %v2283_v12, %v821_v16  ;;  %v827_v6 = vmul.f32 %v2283_v12, %v822_v7  ;;  %s2761_s5 = sld [smem:[#allocation90_spill]] }
 0x18f   :  { %v833_v23 = vmul.f32 %v832_v38, %v819_v42  ;;  %v834_v32 = vmul.f32 %v832_v38, %v820_v56  ;;  %v835_v26 = vmul.f32 %v832_v38, %v821_v16  ;;  %v836_v31 = vmul.f32 %v832_v38, %v822_v7  ;;  %s2762_s16 = sld [smem:[#allocation91_spill]] }
 0x190   :  { %v2432_v43 = vadd.f32 %v824_v39, %v2286_v52  ;;  %v2435_v47 = vadd.f32 %v825_v28, %v2289_v53  ;;  %v2438_v17 = vadd.f32 %v826_v5, %v2292_v22  ;;  %v2441_v49 = vadd.f32 %v827_v6, %v2295_v20 }
 0x191   :  { %v2444_v9 = vadd.f32 %v833_v23, %v2298_v36  ;;  %v2447_v12 = vadd.f32 %v834_v32, %v2301_v50  ;;  %v2450_v38 = vadd.f32 %v835_v26, %v2304_v59  ;;  %v2453_v52 = vadd.f32 %v836_v31, %v2307_v1 }
 0x192   :  { %v842_v53 = vmul.f32 %v841_v0, %v819_v42  ;;  %v843_v58 = vmul.f32 %v841_v0, %v820_v56  ;;  %v844_v33 = vmul.f32 %v841_v0, %v821_v16  ;;  %v845_v22 = vmul.f32 %v841_v0, %v822_v7 }
 0x193   :  { %v851_v39 = vmul.f32 %v850_v60, %v819_v42  ;;  %v852_v28 = vmul.f32 %v850_v60, %v820_v56  ;;  %v853_v20 = vmul.f32 %v850_v60, %v821_v16  ;;  %v854_v5 = vmul.f32 %v850_v60, %v822_v7 }
 0x194   :  { %v2456_v36 = vadd.f32 %v842_v53, %v2310_v35  ;;  %v2459_v50 = vadd.f32 %v843_v58, %v2313_v8  ;;  %v2462_v59 = vadd.f32 %v844_v33, %v2316_v19  ;;  %v2465_v1 = vadd.f32 %v845_v22, %v2319_v54 }
 0x195   :  { %v2468_v6 = vadd.f32 %v851_v39, %v2322_v34  ;;  %v2471_v0 = vadd.f32 %v852_v28, %v2325_v44  ;;  %v2474_v60 = vadd.f32 %v853_v20, %v2328_v40  ;;  %v2477_v35 = vadd.f32 %v854_v5, %v2331_v25 }
 0x196   :  { %v860_v8 = vmul.f32 %v859_v13, %v819_v42  ;;  %v861_v23 = vmul.f32 %v859_v13, %v820_v56  ;;  %v862_v32 = vmul.f32 %v859_v13, %v821_v16  ;;  %v863_v19 = vmul.f32 %v859_v13, %v822_v7 }
 0x197   :  { %v869_v26 = vmul.f32 %v868_v45, %v819_v42  ;;  %v870_v31 = vmul.f32 %v868_v45, %v820_v56  ;;  %v871_v54 = vmul.f32 %v868_v45, %v821_v16  ;;  %v872_v53 = vmul.f32 %v868_v45, %v822_v7 }
 0x198   :  { %v2480_v34 = vadd.f32 %v860_v8, %v2334_v24  ;;  %v2483_v44 = vadd.f32 %v861_v23, %v2337_v3  ;;  %v2486_v40 = vadd.f32 %v862_v32, %v2340_v37  ;;  %v2489_v25 = vadd.f32 %v863_v19, %v2343_v15 }
 0x199   :  { %v2492_v58 = vadd.f32 %v869_v26, %v2346_v4  ;;  %v2495_v13 = vadd.f32 %v870_v31, %v2349_v51  ;;  %v2498_v45 = vadd.f32 %v871_v54, %v2352_v57  ;;  %v2501_v24 = vadd.f32 %v872_v53, %v2355_v63 }
 0x19a   :  { %v878_v3 = vmul.f32 %v877_v62, %v819_v42  ;;  %v879_v33 = vmul.f32 %v877_v62, %v820_v56  ;;  %v880_v22 = vmul.f32 %v877_v62, %v821_v16  ;;  %v881_v37 = vmul.f32 %v877_v62, %v822_v7 }
 0x19b   :  { %v887_v39 = vmul.f32 %v2408_v10, %v819_v42  ;;  %v888_v15 = vmul.f32 %v2408_v10, %v820_v56  ;;  %v889_v4 = vmul.f32 %v2408_v10, %v821_v16  ;;  %v890_v28 = vmul.f32 %v2408_v10, %v822_v7 }
 0x19c   :  { %v2508_v51 = vadd.f32 %v878_v3, %v2358_v48  ;;  %v2511_v57 = vadd.f32 %v879_v33, %v2361_v30  ;;  %v2514_v63 = vadd.f32 %v880_v22, %v2364_v27  ;;  %v2517_v20 = vadd.f32 %v881_v37, %v2367_v14 }
 0x19d   :  { %v2520_v62 = vadd.f32 %v887_v39, %v2370_v21  ;;  %v2523_v42 = vadd.f32 %v888_v15, %v2373_v29  ;;  %v2526_v10 = vadd.f32 %v889_v4, %v2376_v2  ;;  %v2529_v48 = vadd.f32 %v890_v28, %v2379_v11 }
 0x19e   :  { %v895_v30 = vmax.f32 %v2432_v43, 0.0  ;;  %v896_v27 = vmax.f32 %v2435_v47, 0.0  ;;  %v897_v56 = vmax.f32 %v2438_v17, 0.0  ;;  %v898_v14 = vmax.f32 %v2441_v49, 0.0 }
 0x19f   :  { %v909_v21 = vmax.f32 %v2444_v9, 0.0  ;;  %v910_v16 = vmax.f32 %v2447_v12, 0.0  ;;  %v911_v29 = vmax.f32 %v2450_v38, 0.0  ;;  %v912_v2 = vmax.f32 %v2453_v52, 0.0 }
 0x1a0   :  { %v900_v7 = vmul.f32 %v2411_v61, %v895_v30  ;;  %v901_v11 = vmul.f32 %v2411_v61, %v896_v27  ;;  %v902_v43 = vmul.f32 %v2411_v61, %v897_v56  ;;  %v903_v47 = vmul.f32 %v2411_v61, %v898_v14 }
 0x1a1   :  { %v914_v17 = vmul.f32 %v2419_v41, %v909_v21  ;;  %v915_v49 = vmul.f32 %v2419_v41, %v910_v16  ;;  %v916_v9 = vmul.f32 %v2419_v41, %v911_v29  ;;  %v917_v12 = vmul.f32 %v2419_v41, %v912_v2 }
 0x1a2   :  { %v905_v38 = vadd.f32 %v2416_v55, %v900_v7  ;;  %v906_v52 = vadd.f32 %v2416_v55, %v901_v11  ;;  %v907_v5 = vadd.f32 %v2416_v55, %v902_v43  ;;  %v908_v8 = vadd.f32 %v2416_v55, %v903_v47 }
 0x1a3   :  { %v922_v23 = vmax.f32 %v2456_v36, 0.0  ;;  %v923_v61 = vmax.f32 %v2459_v50, 0.0  ;;  %v924_v32 = vmax.f32 %v2462_v59, 0.0  ;;  %v925_v19 = vmax.f32 %v2465_v1, 0.0 }
 0x1a4   :  { %v918_v26 = vadd.f32 %v914_v17, %v905_v38  ;;  %v919_v31 = vadd.f32 %v915_v49, %v906_v52  ;;  %v920_v54 = vadd.f32 %v916_v9, %v907_v5  ;;  %v921_v41 = vadd.f32 %v917_v12, %v908_v8 }
 0x1a5   :  { %v927_v53 = vmul.f32 %v2422_v46, %v922_v23  ;;  %v928_v3 = vmul.f32 %v2422_v46, %v923_v61  ;;  %v929_v33 = vmul.f32 %v2422_v46, %v924_v32  ;;  %v930_v55 = vmul.f32 %v2422_v46, %v925_v19 }
 0x1a6   :  { %v935_v36 = vmax.f32 %v2468_v6, 0.0  ;;  %v936_v50 = vmax.f32 %v2471_v0, 0.0  ;;  %v937_v59 = vmax.f32 %v2474_v60, 0.0  ;;  %v938_v1 = vmax.f32 %v2477_v35, 0.0 }
 0x1a7   :  { %v931_v22 = vadd.f32 %v927_v53, %v918_v26  ;;  %v932_v37 = vadd.f32 %v928_v3, %v919_v31  ;;  %v933_v39 = vadd.f32 %v929_v33, %v920_v54  ;;  %v934_v15 = vadd.f32 %v930_v55, %v921_v41 }
 0x1a8   :  { %v940_v4 = vmul.f32 %v2425_v18, %v935_v36  ;;  %v941_v28 = vmul.f32 %v2425_v18, %v936_v50  ;;  %v942_v30 = vmul.f32 %v2425_v18, %v937_v59  ;;  %v943_v46 = vmul.f32 %v2425_v18, %v938_v1 }
 0x1a9   :  { %v948_v6 = vmax.f32 %v2480_v34, 0.0  ;;  %v949_v0 = vmax.f32 %v2483_v44, 0.0  ;;  %v950_v60 = vmax.f32 %v2486_v40, 0.0  ;;  %v951_v35 = vmax.f32 %v2489_v25, 0.0 }
 0x1aa   :  { %v944_v27 = vadd.f32 %v940_v4, %v931_v22  ;;  %v945_v56 = vadd.f32 %v941_v28, %v932_v37  ;;  %v946_v14 = vadd.f32 %v942_v30, %v933_v39  ;;  %v947_v21 = vadd.f32 %v943_v46, %v934_v15 }
 0x1ab   :  { %v952_v16 = vstv %s2760_s30  ;;  %v961_v29 = vmax.f32 %v2492_v58, 0.0  ;;  %v962_v2 = vmax.f32 %v2495_v13, 0.0  ;;  %v963_v18 = vmax.f32 %v2498_v45, 0.0 }
 0x1ac   :  { %v953_v7 = vmul.f32 %v952_v16, %v948_v6  ;;  %v954_v34 = vmul.f32 %v952_v16, %v949_v0  ;;  %v955_v11 = vmul.f32 %v952_v16, %v950_v60  ;;  %v956_v44 = vmul.f32 %v952_v16, %v951_v35 }
 0x1ad   :  { %v964_v40 = vmax.f32 %v2501_v24, 0.0  ;;  %v965_v43 = vstv %s2761_s5  ;;  %v974_v25 = vmax.f32 %v2508_v51, 0.0  ;;  %v975_v47 = vmax.f32 %v2511_v57, 0.0 }
 0x1ae   :  { %v957_v17 = vadd.f32 %v953_v7, %v944_v27  ;;  %v958_v49 = vadd.f32 %v954_v34, %v945_v56  ;;  %v959_v9 = vadd.f32 %v955_v11, %v946_v14  ;;  %v960_v58 = vadd.f32 %v956_v44, %v947_v21 }
 0x1af   :  { %v966_v12 = vmul.f32 %v965_v43, %v961_v29  ;;  %v967_v13 = vmul.f32 %v965_v43, %v962_v2  ;;  %v968_v38 = vmul.f32 %v965_v43, %v963_v18  ;;  %v969_v45 = vmul.f32 %v965_v43, %v964_v40 }
 0x1b0   :  { %v976_v52 = vmax.f32 %v2514_v63, 0.0  ;;  %v977_v5 = vmax.f32 %v2517_v20, 0.0  ;;  %v978_v8 = vstv %s2762_s16  ;;  %v987_v24 = vmax.f32 %v2520_v62, 0.0 }
 0x1b1   :  { %v970_v23 = vadd.f32 %v966_v12, %v957_v17  ;;  %v971_v51 = vadd.f32 %v967_v13, %v958_v49  ;;  %v972_v61 = vadd.f32 %v968_v38, %v959_v9  ;;  %v973_v57 = vadd.f32 %v969_v45, %v960_v58 }
 0x1b2   :  { %v979_v32 = vmul.f32 %v978_v8, %v974_v25  ;;  %v980_v19 = vmul.f32 %v978_v8, %v975_v47  ;;  %v981_v26 = vmul.f32 %v978_v8, %v976_v52  ;;  %v982_v31 = vmul.f32 %v978_v8, %v977_v5 }
 0x1b3   :  { %v988_v54 = vmax.f32 %v2523_v42, 0.0  ;;  %v989_v41 = vmax.f32 %v2526_v10, 0.0  ;;  %v990_v53 = vmax.f32 %v2529_v48, 0.0  ;;  %v991_v63 = vstv %s2763_s7 }
 0x1b4   :  { %v983_v3 = vadd.f32 %v979_v32, %v970_v23  ;;  %v984_v20 = vadd.f32 %v980_v19, %v971_v51  ;;  %v985_v33 = vadd.f32 %v981_v26, %v972_v61  ;;  %v986_v55 = vadd.f32 %v982_v31, %v973_v57 }
 0x1b5   :  { %v992_v62 = vmul.f32 %v991_v63, %v987_v24  ;;  %v993_v36 = vmul.f32 %v991_v63, %v988_v54  ;;  %v994_v50 = vmul.f32 %v991_v63, %v989_v41  ;;  %v995_v59 = vmul.f32 %v991_v63, %v990_v53 }
 0x1b7   :  { %v996_v1 = vadd.f32 %v992_v62, %v983_v3  ;;  %v997_v22 = vadd.f32 %v993_v36, %v984_v20  ;;  %v998_v37 = vadd.f32 %v994_v50, %v985_v33  ;;  %v999_v39 = vadd.f32 %v995_v59, %v986_v55 }
 0x1b9   :  { %1000 = vst [vmem:[#allocation13] sm:$0xff] %v996_v1  ;;  %1001 = vst [vmem:[#allocation13 + $0x8] sm:$0xff] %v997_v22 }
 0x1ba   :  { %1002 = vst [vmem:[#allocation13 + $0x10] sm:$0xff] %v998_v37  ;;  %1003 = vst [vmem:[#allocation13 + $0x18] sm:$0xff] %v999_v39 }
 0x1bb PF:  { %1008 = vsyncadd [#allocation5], 496  ;;  %s1221_s8 = smov [#allocation13]  }
 0x1bc   :  { %s1009_s26 = sshll.u32 %s1221_s8, 4  ;;  %s1010_s26 = int_to_ptr.vmem [resolvable:$true] %s1009_s26 }
 0x1bd   :  { %s1188_s27 = scalar_lea.vmem %s1010_s26, 16  ;;  %s1192_s28 = scalar_lea.vmem %s1010_s26, 512 }
 0x1be   :  { %p1189_p12 = scmp.ne.s32.totalorder %s1010_s26, %s1188_s27  ;;  %p1193_p13 = scmp.lt.s32.totalorder %s1010_s26, %s1010_s26 }
 0x1bf   :  { %p1194_p0 = scmp.lt.s32.totalorder %s1192_s28, %s1188_s27 }
 0x1c1   :  { %p1195_p1 = por %p1194_p0, %p1193_p13 }
 0x1c3   :  { %p1196_p2 = pnand %p1195_p1, %p1189_p12 }
 0x1c5   :  { %1199 = shalt.err (!%p1196_p2)
}
 0x1c6   :  { %s1222_s29 = smov 16   ;;  %s1223_s10 = smov 1  }
 0x1c7   :  { %s2764_s13 = sld [smem:[#allocation96_spill]] }
 0x1cd   :  { %1015 = dma.vmem_to_hbm [thread:$0]  %s1010_s26, 16, %s2764_s13, [#allocation5], %s1222_s29, %s1222_s29, %s1223_s10  }
 0x1ce   :  { %1214 = dma.done.wait [#allocation5], 512  }
 0x1cf   :  { %1215 = vsyncadd [#allocation5], 4294966784 }
 0x1d0   :  { %1019 = vsyncpa [#allocation5], 1 }
 0x1d1   :  { %1020 = vsyncpa [#allocation6], 1 }
 0x1d2   :  { %1021 = vsyncpa [#allocation8], 1 }
 0x1d3   :  { %1022 = vsyncpa [#allocation11], 1 }

</bundles_post_ra>
